<compile_context>
chip_gen: v7x
topology: tpu7x:2x2x1
jax: 0.10.0
libtpu: 0.0.40
codegen_flags: <defaults>
</compile_context>

<pallas_src>
import math

import jax
import jax.numpy as jnp
from jax.experimental import pallas as pl
from jax.experimental.pallas import tpu as pltpu

# ----- small, module-consistent sizes -----
B = 2        # number of graphs
N = 16       # nodes per graph
F_IN = 8     # input node-feature dim
L = 32       # args.l_dim
H = 32       # args.h_dim
C = 4        # n_classes
FLOW = 4     # flow_length

LOG_2P5 = math.log(2.5)


def _dot(a, b):
    return jnp.dot(a, b, preferred_element_type=jnp.float32)


def iaf_fused_kernel(g_ref, x_ref, lab_ref,
                     ws_ref, bs_ref,               # s_gcn:        (F_IN, L), (1, L)
                     wml_ref, bml_ref,             # mu|logvar:    (L, 2L),   (1, 2L)
                     wvec_ref, bvec_ref,           # vec:          (L, 1),    (1, 1)
                     wdec_ref, bdec_ref,           # dec:          (1, L),    (1, L)
                     wih_ref, whh_ref, blstm_ref,  # (FLOW,L,4L), (L,FLOW*4L), (1,FLOW*4L)
                     beta_ref,                     # (1, 1)
                     w1_ref, b1_ref, w2_ref, b2_ref,   # classifier: (L,H),(1,H),(H,C),(1,C)
                     loss_ref, acc_ref):
    act = lambda v: jnp.maximum(v, 0.0)            # ReLU (act_n / act_c)
    BN = B * N

    # ---- norm_g per graph (reciprocal goes to the EUP slot) ------------------
    g0 = g_ref[0]                                                   # (N, N)
    g1 = g_ref[1]
    g0 = g0 * pl.reciprocal(jnp.sum(g0, axis=1, keepdims=True), approx=True)
    g1 = g1 * pl.reciprocal(jnp.sum(g1, axis=1, keepdims=True), approx=True)

    def gprop(v):          # block-diag(g0, g1) @ v     v: (BN, D)
        return jnp.concatenate([_dot(g0, v[:N, :]), _dot(g1, v[N:, :])], axis=0)

    # stack both graphs' node features into one (BN, F_IN) slab (sublane concat)
    x = jnp.concatenate([x_ref[0], x_ref[1]], axis=0)               # (BN, F_IN)

    # ---- s_gcn ----------------------------------------------------------------
    h = act(_dot(gprop(x), ws_ref[...]) + bs_ref[...])              # (BN, L); r = h

    # ---- mu / logvar: share hoisted g@h, concatenated (L, 2L) projection ------
    gh = gprop(h)                                                   # (BN, L)
    ml = act(_dot(gh, wml_ref[...]) + bml_ref[...])                 # (BN, 2L)
    mu = ml[:, :L]
    logvar = ml[:, L:]

    # eval-mode reparameterize: eps = 0 => z0 = mu, kl = -0.5*(logvar + eps^2)
    z0 = mu
    kl = -0.5 * logvar
    z = z0

    # ---- IAF flow -------------------------------------------------------------
    # hidden path (z0, c0 = 1) is constant across flow steps, so the hidden-matmuls
    # of all FLOW layers + (bias_ih + bias_hh) are one (BN,L)@(L,FLOW*4L) matmul.
    hh_all = _dot(z0, whh_ref[...]) + blstm_ref[...]                # (BN, FLOW*4L)

    s_prod = jnp.ones_like(z)                                       # deferred log(s+eps)
    for l in range(FLOW):
        gates = _dot(z, wih_ref[l]) + hh_all[:, l * 4 * L:(l + 1) * 4 * L]  # (BN, 4L)
        sg = jax.nn.sigmoid(gates)      # single full-128-lane transcendental pass
        i_g = sg[:, 0 * L:1 * L]
        f_g = sg[:, 1 * L:2 * L]
        g_g = 2.0 * sg[:, 2 * L:3 * L] - 1.0   # tanh(a) = 2*sigmoid(2a)-1 (g cols pre-scaled x2)
        o_g = sg[:, 3 * L:4 * L]
        c_new = f_g + i_g * g_g          # f*c0 + i*g with c0 == 1  (LSTMCell cell state s)
        m = o_g * jnp.tanh(c_new)        # LSTMCell hidden state m
        s = jax.nn.sigmoid(c_new + 2.0)
        z = s * z + (1.0 - s) * m
        s_prod = s_prod * (s + 1e-5)
    kl = kl - jnp.log(s_prod)            # == - sum_l log(s_l + 1e-5)

    # loggaussian(z, 0, 1) = -0.5*z^2 - log(2.5)  (2.5 is literal in the reference)
    kl = kl + 0.5 * z * z + LOG_2P5

    # ---- vec / dec GCNs -------------------------------------------------------
    zv = act(_dot(gprop(z), wvec_ref[...]) + bvec_ref[...])         # (BN, 1)
    zk = jax.nn.sigmoid(beta_ref[...] * zv)                         # (BN, 1)
    d = act(_dot(gprop(zk), wdec_ref[...]) + bdec_ref[...])         # (BN, L)

    # ---- per-graph pooled h = (h.T @ zk).squeeze() ----------------------------
    hz = h * zk                                                     # (BN, L)
    pooled = jnp.concatenate(
        [jnp.sum(hz[:N, :], axis=0, keepdims=True),
         jnp.sum(hz[N:, :], axis=0, keepdims=True)], axis=0)        # (B, L)

    # ---- classify (eval: out_drop = identity) + log_softmax -------------------
    hc = act(_dot(pooled, w1_ref[...]) + b1_ref[...])               # (B, H)
    logits = _dot(hc, w2_ref[...]) + b2_ref[...]                    # (B, C)
    mx = jnp.max(logits, axis=1, keepdims=True)
    lse = jnp.log(jnp.sum(jnp.exp(logits - mx), axis=1, keepdims=True)) + mx
    logp = logits - lse

    # ---- metric, fully in-kernel ----------------------------------------------
    lab = lab_ref[...]                                              # (B, 1) float labels
    cidx = jax.lax.broadcasted_iota(jnp.int32, (B, C), 1).astype(jnp.float32)
    onehot = (cidx == lab).astype(jnp.float32)                      # (B, C)
    label_logp = jnp.sum(onehot * logp, axis=1, keepdims=True)      # (B, 1)
    nll = -jnp.sum(label_logp, axis=0, keepdims=True) * (1.0 / B)   # (1, 1) F.nll_loss

    inv = 1.0 / float(BN * L)
    diff = h - d
    mse = jnp.sum(jnp.sum(diff * diff, axis=1, keepdims=True),
                  axis=0, keepdims=True) * inv                      # mean((r-d)^2)
    klm = jnp.sum(jnp.sum(kl, axis=1, keepdims=True),
                  axis=0, keepdims=True) * inv                      # kls.mean()

    # argmax via first-max-index trick (matches torch.max tie behavior)
    pred = jnp.min(jnp.where(logits >= mx, cidx, float(C)), axis=1, keepdims=True)
    correct = (pred == lab).astype(jnp.float32)                     # (B, 1)

    loss_ref[...] = nll + mse + klm
    acc_ref[...] = jnp.sum(correct, axis=0, keepdims=True) * (1.0 / B)


def iaf_forward(params, gs, hs, labels):
    p = params
    labels_f = labels.astype(jnp.float32).reshape(B, 1)
    args = (gs, hs, labels_f,
            p["ws"], p["bs"], p["wml"], p["bml"],
            p["wvec"], p["bvec"], p["wdec"], p["bdec"],
            p["wih"], p["whh"], p["blstm"], p["beta"],
            p["w1"], p["b1"], p["w2"], p["b2"])

    vmem = lambda: pl.BlockSpec(memory_space=pltpu.MemorySpace.VMEM)
    loss, acc = pl.pallas_call(
        iaf_fused_kernel,
        out_shape=(jax.ShapeDtypeStruct((1, 1), jnp.float32),
                   jax.ShapeDtypeStruct((1, 1), jnp.float32)),
        in_specs=[vmem() for _ in range(len(args))],
        out_specs=(vmem(), vmem()),
    )(*args)
    return loss[0, 0], acc[0, 0]


def init_params(key):
    ks = jax.random.split(key, 16)
    nrm = lambda k, shape, scale=0.2: scale * jax.random.normal(k, shape, jnp.float32)

    # LSTMCell weights drawn as in the torch module (std=1.0), laid out for the kernel:
    #  - input->gates per layer, gate order [i|f|g|o] along columns: (FLOW, L, 4L)
    #  - hidden->gates of all flow layers fused along columns:        (L, FLOW*4L)
    #  - bias_ih + bias_hh folded, per layer/gate along columns:      (1, FLOW*4L)
    wih_raw = jax.random.normal(ks[8], (FLOW, L, 4 * L), jnp.float32)
    whh_raw = jax.random.normal(ks[9], (L, FLOW * 4 * L), jnp.float32)
    blstm_raw = jax.random.normal(ks[10], (1, FLOW * 4 * L), jnp.float32)

    # Pre-scale the g-gate columns (2L:3L of each layer's 4L block) by 2 so the kernel
    # computes tanh(a) as 2*sigmoid(2a)-1 within the single full-width sigmoid pass.
    gate_scale = jnp.concatenate([jnp.ones((L,), jnp.float32),
                                  jnp.ones((L,), jnp.float32),
                                  jnp.full((L,), 2.0, jnp.float32),
                                  jnp.ones((L,), jnp.float32)])        # (4L,)
    gate_scale_all = jnp.tile(gate_scale, (FLOW,))                      # (FLOW*4L,)

    params = {
        "ws":   nrm(ks[0], (F_IN, L)),   "bs":  nrm(ks[1], (1, L)),
        # mu | logvar GCN projections concatenated along the output (lane) dim
        "wml":  nrm(ks[2], (L, 2 * L)),  "bml": nrm(ks[3], (1, 2 * L)),
        "wvec": nrm(ks[4], (L, 1)),      "bvec": nrm(ks[5], (1, 1)),
        "wdec": nrm(ks[6], (1, L)),      "bdec": nrm(ks[7], (1, L)),
        "wih":   wih_raw * gate_scale[None, None, :],
        "whh":   whh_raw * gate_scale_all[None, :],
        "blstm": blstm_raw * gate_scale_all[None, :],
        "beta":  jax.random.uniform(ks[11], (1, 1), jnp.float32, 0.0, 100.0),
        "w1":   nrm(ks[12], (L, H)),     "b1": jnp.zeros((1, H), jnp.float32),
        "w2":   nrm(ks[13], (H, C)),     "b2": jnp.zeros((1, C), jnp.float32),
    }
    return params


if __name__ == "__main__":
    key = jax.random.PRNGKey(0)
    k_g, k_h, k_l, k_p = jax.random.split(key, 4)

    # adjacency: positive entries so row sums are nonzero (norm_g is well-defined)
    gs = jax.random.uniform(k_g, (B, N, N), jnp.float32, 0.1, 1.0)
    hs = jax.random.normal(k_h, (B, N, F_IN), jnp.float32)
    labels = jax.random.randint(k_l, (B,), 0, C)

    params = init_params(k_p)

    loss, acc = iaf_forward(params, gs, hs, labels)
    jax.block_until_ready((loss, acc))
    print("KERNEL_OK")
</pallas_src>

<mosaic_0001>
module attributes {stable_mosaic.version = 11 : i64} {
  func.func @iaf_fused_kernel(%arg0: memref<2x16x16xf32, #tpu.memory_space<vmem>>, %arg1: memref<2x16x8xf32, #tpu.memory_space<vmem>>, %arg2: memref<2x1xf32, #tpu.memory_space<vmem>>, %arg3: memref<8x32xf32, #tpu.memory_space<vmem>>, %arg4: memref<1x32xf32, #tpu.memory_space<vmem>>, %arg5: memref<32x64xf32, #tpu.memory_space<vmem>>, %arg6: memref<1x64xf32, #tpu.memory_space<vmem>>, %arg7: memref<32x1xf32, #tpu.memory_space<vmem>>, %arg8: memref<1x1xf32, #tpu.memory_space<vmem>>, %arg9: memref<1x32xf32, #tpu.memory_space<vmem>>, %arg10: memref<1x32xf32, #tpu.memory_space<vmem>>, %arg11: memref<4x32x128xf32, #tpu.memory_space<vmem>>, %arg12: memref<32x512xf32, #tpu.memory_space<vmem>>, %arg13: memref<1x512xf32, #tpu.memory_space<vmem>>, %arg14: memref<1x1xf32, #tpu.memory_space<vmem>>, %arg15: memref<32x32xf32, #tpu.memory_space<vmem>>, %arg16: memref<1x32xf32, #tpu.memory_space<vmem>>, %arg17: memref<32x4xf32, #tpu.memory_space<vmem>>, %arg18: memref<1x4xf32, #tpu.memory_space<vmem>>, %arg19: memref<1x1xf32, #tpu.memory_space<vmem>>, %arg20: memref<1x1xf32, #tpu.memory_space<vmem>>) attributes {dimension_semantics = [], scalar_prefetch = 0 : i64, scratch_operands = 0 : i64, tpu.core_type = #tpu.core_type<tc>} {
    %c0 = arith.constant 0 : index
    %c0_0 = arith.constant 0 : index
    %c0_1 = arith.constant 0 : index
    %0 = vector.load %arg0[%c0, %c0_0, %c0_1] : memref<2x16x16xf32, #tpu.memory_space<vmem>>, vector<1x16x16xf32>
    %1 = vector.shape_cast %0 : vector<1x16x16xf32> to vector<16x16xf32>
    %c1 = arith.constant 1 : index
    %c0_2 = arith.constant 0 : index
    %c0_3 = arith.constant 0 : index
    %2 = vector.load %arg0[%c1, %c0_2, %c0_3] : memref<2x16x16xf32, #tpu.memory_space<vmem>>, vector<1x16x16xf32>
    %3 = vector.shape_cast %2 : vector<1x16x16xf32> to vector<16x16xf32>
    %cst = arith.constant dense<0.000000e+00> : vector<16xf32>
    %4 = vector.multi_reduction <add>, %1, %cst [1] : vector<16x16xf32> to vector<16xf32>
    %5 = vector.shape_cast %4 : vector<16xf32> to vector<16x1xf32>
    %6 = tpu.reciprocal %5 {approx = true} : vector<16x1xf32> -> vector<16x1xf32>
    %7 = vector.broadcast %6 : vector<16x1xf32> to vector<16x16xf32>
    %8 = arith.mulf %1, %7 : vector<16x16xf32>
    %cst_4 = arith.constant dense<0.000000e+00> : vector<16xf32>
    %9 = vector.multi_reduction <add>, %3, %cst_4 [1] : vector<16x16xf32> to vector<16xf32>
    %10 = vector.shape_cast %9 : vector<16xf32> to vector<16x1xf32>
    %11 = tpu.reciprocal %10 {approx = true} : vector<16x1xf32> -> vector<16x1xf32>
    %12 = vector.broadcast %11 : vector<16x1xf32> to vector<16x16xf32>
    %13 = arith.mulf %3, %12 : vector<16x16xf32>
    %c0_5 = arith.constant 0 : index
    %c0_6 = arith.constant 0 : index
    %c0_7 = arith.constant 0 : index
    %14 = vector.load %arg1[%c0_5, %c0_6, %c0_7] : memref<2x16x8xf32, #tpu.memory_space<vmem>>, vector<1x16x8xf32>
    %15 = vector.shape_cast %14 : vector<1x16x8xf32> to vector<16x8xf32>
    %c1_8 = arith.constant 1 : index
    %c0_9 = arith.constant 0 : index
    %c0_10 = arith.constant 0 : index
    %16 = vector.load %arg1[%c1_8, %c0_9, %c0_10] : memref<2x16x8xf32, #tpu.memory_space<vmem>>, vector<1x16x8xf32>
    %17 = vector.shape_cast %16 : vector<1x16x8xf32> to vector<16x8xf32>
    %18 = tpu.concatenate %15, %17 in 0 : vector<16x8xf32>, vector<16x8xf32> -> vector<32x8xf32>
    %19 = vector.extract_strided_slice %18 {offsets = [0, 0], sizes = [16, 8], strides = [1, 1]} : vector<32x8xf32> to vector<16x8xf32>
    %cst_11 = arith.constant dense<0.000000e+00> : vector<16x8xf32>
    %20 = tpu.matmul %8, %19, %cst_11 {dimension_numbers = #tpu.dot_dimension_numbers<[1], [0], [0], [1], [0, 0, 1, 1], [], []>} : vector<16x16xf32>, vector<16x8xf32>, vector<16x8xf32> -> vector<16x8xf32>
    %21 = vector.extract_strided_slice %18 {offsets = [16, 0], sizes = [16, 8], strides = [1, 1]} : vector<32x8xf32> to vector<16x8xf32>
    %cst_12 = arith.constant dense<0.000000e+00> : vector<16x8xf32>
    %22 = tpu.matmul %13, %21, %cst_12 {dimension_numbers = #tpu.dot_dimension_numbers<[1], [0], [0], [1], [0, 0, 1, 1], [], []>} : vector<16x16xf32>, vector<16x8xf32>, vector<16x8xf32> -> vector<16x8xf32>
    %23 = tpu.concatenate %20, %22 in 0 : vector<16x8xf32>, vector<16x8xf32> -> vector<32x8xf32>
    %c0_13 = arith.constant 0 : index
    %c0_14 = arith.constant 0 : index
    %24 = vector.load %arg3[%c0_13, %c0_14] : memref<8x32xf32, #tpu.memory_space<vmem>>, vector<8x32xf32>
    %cst_15 = arith.constant dense<0.000000e+00> : vector<32x32xf32>
    %25 = tpu.matmul %23, %24, %cst_15 {dimension_numbers = #tpu.dot_dimension_numbers<[1], [0], [0], [1], [0, 0, 1, 1], [], []>} : vector<32x8xf32>, vector<8x32xf32>, vector<32x32xf32> -> vector<32x32xf32>
    %c0_16 = arith.constant 0 : index
    %c0_17 = arith.constant 0 : index
    %26 = vector.load %arg4[%c0_16, %c0_17] : memref<1x32xf32, #tpu.memory_space<vmem>>, vector<1x32xf32>
    %27 = vector.broadcast %26 : vector<1x32xf32> to vector<32x32xf32>
    %28 = arith.addf %25, %27 : vector<32x32xf32>
    %cst_18 = arith.constant 0.000000e+00 : f32
    %29 = vector.broadcast %cst_18 : f32 to vector<32x32xf32>
    %30 = arith.maximumf %28, %29 : vector<32x32xf32>
    %31 = vector.extract_strided_slice %30 {offsets = [0, 0], sizes = [16, 32], strides = [1, 1]} : vector<32x32xf32> to vector<16x32xf32>
    %cst_19 = arith.constant dense<0.000000e+00> : vector<16x32xf32>
    %32 = tpu.matmul %8, %31, %cst_19 {dimension_numbers = #tpu.dot_dimension_numbers<[1], [0], [0], [1], [0, 0, 1, 1], [], []>} : vector<16x16xf32>, vector<16x32xf32>, vector<16x32xf32> -> vector<16x32xf32>
    %33 = vector.extract_strided_slice %30 {offsets = [16, 0], sizes = [16, 32], strides = [1, 1]} : vector<32x32xf32> to vector<16x32xf32>
    %cst_20 = arith.constant dense<0.000000e+00> : vector<16x32xf32>
    %34 = tpu.matmul %13, %33, %cst_20 {dimension_numbers = #tpu.dot_dimension_numbers<[1], [0], [0], [1], [0, 0, 1, 1], [], []>} : vector<16x16xf32>, vector<16x32xf32>, vector<16x32xf32> -> vector<16x32xf32>
    %35 = tpu.concatenate %32, %34 in 0 : vector<16x32xf32>, vector<16x32xf32> -> vector<32x32xf32>
    %c0_21 = arith.constant 0 : index
    %c0_22 = arith.constant 0 : index
    %36 = vector.load %arg5[%c0_21, %c0_22] : memref<32x64xf32, #tpu.memory_space<vmem>>, vector<32x64xf32>
    %cst_23 = arith.constant dense<0.000000e+00> : vector<32x64xf32>
    %37 = tpu.matmul %35, %36, %cst_23 {dimension_numbers = #tpu.dot_dimension_numbers<[1], [0], [0], [1], [0, 0, 1, 1], [], []>} : vector<32x32xf32>, vector<32x64xf32>, vector<32x64xf32> -> vector<32x64xf32>
    %c0_24 = arith.constant 0 : index
    %c0_25 = arith.constant 0 : index
    %38 = vector.load %arg6[%c0_24, %c0_25] : memref<1x64xf32, #tpu.memory_space<vmem>>, vector<1x64xf32>
    %39 = vector.broadcast %38 : vector<1x64xf32> to vector<32x64xf32>
    %40 = arith.addf %37, %39 : vector<32x64xf32>
    %cst_26 = arith.constant 0.000000e+00 : f32
    %41 = vector.broadcast %cst_26 : f32 to vector<32x64xf32>
    %42 = arith.maximumf %40, %41 : vector<32x64xf32>
    %43 = vector.extract_strided_slice %42 {offsets = [0, 0], sizes = [32, 32], strides = [1, 1]} : vector<32x64xf32> to vector<32x32xf32>
    %44 = vector.extract_strided_slice %42 {offsets = [0, 32], sizes = [32, 32], strides = [1, 1]} : vector<32x64xf32> to vector<32x32xf32>
    %cst_27 = arith.constant -5.000000e-01 : f32
    %45 = vector.broadcast %cst_27 : f32 to vector<32x32xf32>
    %46 = arith.mulf %45, %44 : vector<32x32xf32>
    %c0_28 = arith.constant 0 : index
    %c0_29 = arith.constant 0 : index
    %47 = vector.load %arg12[%c0_28, %c0_29] : memref<32x512xf32, #tpu.memory_space<vmem>>, vector<32x512xf32>
    %cst_30 = arith.constant dense<0.000000e+00> : vector<32x512xf32>
    %48 = tpu.matmul %43, %47, %cst_30 {dimension_numbers = #tpu.dot_dimension_numbers<[1], [0], [0], [1], [0, 0, 1, 1], [], []>} : vector<32x32xf32>, vector<32x512xf32>, vector<32x512xf32> -> vector<32x512xf32>
    %c0_31 = arith.constant 0 : index
    %c0_32 = arith.constant 0 : index
    %49 = vector.load %arg13[%c0_31, %c0_32] : memref<1x512xf32, #tpu.memory_space<vmem>>, vector<1x512xf32>
    %50 = vector.broadcast %49 : vector<1x512xf32> to vector<32x512xf32>
    %51 = arith.addf %48, %50 : vector<32x512xf32>
    %cst_33 = arith.constant 1.000000e+00 : f32
    %52 = vector.broadcast %cst_33 : f32 to vector<32x32xf32>
    %c0_34 = arith.constant 0 : index
    %c0_35 = arith.constant 0 : index
    %c0_36 = arith.constant 0 : index
    %53 = vector.load %arg11[%c0_34, %c0_35, %c0_36] : memref<4x32x128xf32, #tpu.memory_space<vmem>>, vector<1x32x128xf32>
    %54 = vector.shape_cast %53 : vector<1x32x128xf32> to vector<32x128xf32>
    %cst_37 = arith.constant dense<0.000000e+00> : vector<32x128xf32>
    %55 = tpu.matmul %43, %54, %cst_37 {dimension_numbers = #tpu.dot_dimension_numbers<[1], [0], [0], [1], [0, 0, 1, 1], [], []>} : vector<32x32xf32>, vector<32x128xf32>, vector<32x128xf32> -> vector<32x128xf32>
    %56 = vector.extract_strided_slice %51 {offsets = [0, 0], sizes = [32, 128], strides = [1, 1]} : vector<32x512xf32> to vector<32x128xf32>
    %57 = arith.addf %55, %56 : vector<32x128xf32>
    %58 = arith.negf %57 : vector<32x128xf32>
    %59 = math.exp %58 : vector<32x128xf32>
    %cst_38 = arith.constant 1.000000e+00 : f32
    %60 = vector.broadcast %cst_38 : f32 to vector<32x128xf32>
    %61 = arith.addf %60, %59 : vector<32x128xf32>
    %62 = arith.divf %60, %61 : vector<32x128xf32>
    %63 = vector.extract_strided_slice %62 {offsets = [0, 0], sizes = [32, 32], strides = [1, 1]} : vector<32x128xf32> to vector<32x32xf32>
    %64 = vector.extract_strided_slice %62 {offsets = [0, 32], sizes = [32, 32], strides = [1, 1]} : vector<32x128xf32> to vector<32x32xf32>
    %65 = vector.extract_strided_slice %62 {offsets = [0, 64], sizes = [32, 32], strides = [1, 1]} : vector<32x128xf32> to vector<32x32xf32>
    %cst_39 = arith.constant 2.000000e+00 : f32
    %66 = vector.broadcast %cst_39 : f32 to vector<32x32xf32>
    %67 = arith.mulf %66, %65 : vector<32x32xf32>
    %cst_40 = arith.constant 1.000000e+00 : f32
    %68 = vector.broadcast %cst_40 : f32 to vector<32x32xf32>
    %69 = arith.subf %67, %68 : vector<32x32xf32>
    %70 = vector.extract_strided_slice %62 {offsets = [0, 96], sizes = [32, 32], strides = [1, 1]} : vector<32x128xf32> to vector<32x32xf32>
    %71 = arith.mulf %63, %69 : vector<32x32xf32>
    %72 = arith.addf %64, %71 : vector<32x32xf32>
    %73 = math.tanh %72 : vector<32x32xf32>
    %74 = arith.mulf %70, %73 : vector<32x32xf32>
    %cst_41 = arith.constant 2.000000e+00 : f32
    %75 = vector.broadcast %cst_41 : f32 to vector<32x32xf32>
    %76 = arith.addf %72, %75 : vector<32x32xf32>
    %77 = arith.negf %76 : vector<32x32xf32>
    %78 = math.exp %77 : vector<32x32xf32>
    %cst_42 = arith.constant 1.000000e+00 : f32
    %79 = vector.broadcast %cst_42 : f32 to vector<32x32xf32>
    %80 = arith.addf %79, %78 : vector<32x32xf32>
    %81 = arith.divf %79, %80 : vector<32x32xf32>
    %82 = arith.mulf %81, %43 : vector<32x32xf32>
    %cst_43 = arith.constant 1.000000e+00 : f32
    %83 = vector.broadcast %cst_43 : f32 to vector<32x32xf32>
    %84 = arith.subf %83, %81 : vector<32x32xf32>
    %85 = arith.mulf %84, %74 : vector<32x32xf32>
    %86 = arith.addf %82, %85 : vector<32x32xf32>
    %cst_44 = arith.constant 9.99999974E-6 : f32
    %87 = vector.broadcast %cst_44 : f32 to vector<32x32xf32>
    %88 = arith.addf %81, %87 : vector<32x32xf32>
    %89 = arith.mulf %52, %88 : vector<32x32xf32>
    %c1_45 = arith.constant 1 : index
    %c0_46 = arith.constant 0 : index
    %c0_47 = arith.constant 0 : index
    %90 = vector.load %arg11[%c1_45, %c0_46, %c0_47] : memref<4x32x128xf32, #tpu.memory_space<vmem>>, vector<1x32x128xf32>
    %91 = vector.shape_cast %90 : vector<1x32x128xf32> to vector<32x128xf32>
    %cst_48 = arith.constant dense<0.000000e+00> : vector<32x128xf32>
    %92 = tpu.matmul %86, %91, %cst_48 {dimension_numbers = #tpu.dot_dimension_numbers<[1], [0], [0], [1], [0, 0, 1, 1], [], []>} : vector<32x32xf32>, vector<32x128xf32>, vector<32x128xf32> -> vector<32x128xf32>
    %93 = vector.extract_strided_slice %51 {offsets = [0, 128], sizes = [32, 128], strides = [1, 1]} : vector<32x512xf32> to vector<32x128xf32>
    %94 = arith.addf %92, %93 : vector<32x128xf32>
    %95 = arith.negf %94 : vector<32x128xf32>
    %96 = math.exp %95 : vector<32x128xf32>
    %cst_49 = arith.constant 1.000000e+00 : f32
    %97 = vector.broadcast %cst_49 : f32 to vector<32x128xf32>
    %98 = arith.addf %97, %96 : vector<32x128xf32>
    %99 = arith.divf %97, %98 : vector<32x128xf32>
    %100 = vector.extract_strided_slice %99 {offsets = [0, 0], sizes = [32, 32], strides = [1, 1]} : vector<32x128xf32> to vector<32x32xf32>
    %101 = vector.extract_strided_slice %99 {offsets = [0, 32], sizes = [32, 32], strides = [1, 1]} : vector<32x128xf32> to vector<32x32xf32>
    %102 = vector.extract_strided_slice %99 {offsets = [0, 64], sizes = [32, 32], strides = [1, 1]} : vector<32x128xf32> to vector<32x32xf32>
    %cst_50 = arith.constant 2.000000e+00 : f32
    %103 = vector.broadcast %cst_50 : f32 to vector<32x32xf32>
    %104 = arith.mulf %103, %102 : vector<32x32xf32>
    %cst_51 = arith.constant 1.000000e+00 : f32
    %105 = vector.broadcast %cst_51 : f32 to vector<32x32xf32>
    %106 = arith.subf %104, %105 : vector<32x32xf32>
    %107 = vector.extract_strided_slice %99 {offsets = [0, 96], sizes = [32, 32], strides = [1, 1]} : vector<32x128xf32> to vector<32x32xf32>
    %108 = arith.mulf %100, %106 : vector<32x32xf32>
    %109 = arith.addf %101, %108 : vector<32x32xf32>
    %110 = math.tanh %109 : vector<32x32xf32>
    %111 = arith.mulf %107, %110 : vector<32x32xf32>
    %cst_52 = arith.constant 2.000000e+00 : f32
    %112 = vector.broadcast %cst_52 : f32 to vector<32x32xf32>
    %113 = arith.addf %109, %112 : vector<32x32xf32>
    %114 = arith.negf %113 : vector<32x32xf32>
    %115 = math.exp %114 : vector<32x32xf32>
    %cst_53 = arith.constant 1.000000e+00 : f32
    %116 = vector.broadcast %cst_53 : f32 to vector<32x32xf32>
    %117 = arith.addf %116, %115 : vector<32x32xf32>
    %118 = arith.divf %116, %117 : vector<32x32xf32>
    %119 = arith.mulf %118, %86 : vector<32x32xf32>
    %cst_54 = arith.constant 1.000000e+00 : f32
    %120 = vector.broadcast %cst_54 : f32 to vector<32x32xf32>
    %121 = arith.subf %120, %118 : vector<32x32xf32>
    %122 = arith.mulf %121, %111 : vector<32x32xf32>
    %123 = arith.addf %119, %122 : vector<32x32xf32>
    %cst_55 = arith.constant 9.99999974E-6 : f32
    %124 = vector.broadcast %cst_55 : f32 to vector<32x32xf32>
    %125 = arith.addf %118, %124 : vector<32x32xf32>
    %126 = arith.mulf %89, %125 : vector<32x32xf32>
    %c2 = arith.constant 2 : index
    %c0_56 = arith.constant 0 : index
    %c0_57 = arith.constant 0 : index
    %127 = vector.load %arg11[%c2, %c0_56, %c0_57] : memref<4x32x128xf32, #tpu.memory_space<vmem>>, vector<1x32x128xf32>
    %128 = vector.shape_cast %127 : vector<1x32x128xf32> to vector<32x128xf32>
    %cst_58 = arith.constant dense<0.000000e+00> : vector<32x128xf32>
    %129 = tpu.matmul %123, %128, %cst_58 {dimension_numbers = #tpu.dot_dimension_numbers<[1], [0], [0], [1], [0, 0, 1, 1], [], []>} : vector<32x32xf32>, vector<32x128xf32>, vector<32x128xf32> -> vector<32x128xf32>
    %130 = vector.extract_strided_slice %51 {offsets = [0, 256], sizes = [32, 128], strides = [1, 1]} : vector<32x512xf32> to vector<32x128xf32>
    %131 = arith.addf %129, %130 : vector<32x128xf32>
    %132 = arith.negf %131 : vector<32x128xf32>
    %133 = math.exp %132 : vector<32x128xf32>
    %cst_59 = arith.constant 1.000000e+00 : f32
    %134 = vector.broadcast %cst_59 : f32 to vector<32x128xf32>
    %135 = arith.addf %134, %133 : vector<32x128xf32>
    %136 = arith.divf %134, %135 : vector<32x128xf32>
    %137 = vector.extract_strided_slice %136 {offsets = [0, 0], sizes = [32, 32], strides = [1, 1]} : vector<32x128xf32> to vector<32x32xf32>
    %138 = vector.extract_strided_slice %136 {offsets = [0, 32], sizes = [32, 32], strides = [1, 1]} : vector<32x128xf32> to vector<32x32xf32>
    %139 = vector.extract_strided_slice %136 {offsets = [0, 64], sizes = [32, 32], strides = [1, 1]} : vector<32x128xf32> to vector<32x32xf32>
    %cst_60 = arith.constant 2.000000e+00 : f32
    %140 = vector.broadcast %cst_60 : f32 to vector<32x32xf32>
    %141 = arith.mulf %140, %139 : vector<32x32xf32>
    %cst_61 = arith.constant 1.000000e+00 : f32
    %142 = vector.broadcast %cst_61 : f32 to vector<32x32xf32>
    %143 = arith.subf %141, %142 : vector<32x32xf32>
    %144 = vector.extract_strided_slice %136 {offsets = [0, 96], sizes = [32, 32], strides = [1, 1]} : vector<32x128xf32> to vector<32x32xf32>
    %145 = arith.mulf %137, %143 : vector<32x32xf32>
    %146 = arith.addf %138, %145 : vector<32x32xf32>
    %147 = math.tanh %146 : vector<32x32xf32>
    %148 = arith.mulf %144, %147 : vector<32x32xf32>
    %cst_62 = arith.constant 2.000000e+00 : f32
    %149 = vector.broadcast %cst_62 : f32 to vector<32x32xf32>
    %150 = arith.addf %146, %149 : vector<32x32xf32>
    %151 = arith.negf %150 : vector<32x32xf32>
    %152 = math.exp %151 : vector<32x32xf32>
    %cst_63 = arith.constant 1.000000e+00 : f32
    %153 = vector.broadcast %cst_63 : f32 to vector<32x32xf32>
    %154 = arith.addf %153, %152 : vector<32x32xf32>
    %155 = arith.divf %153, %154 : vector<32x32xf32>
    %156 = arith.mulf %155, %123 : vector<32x32xf32>
    %cst_64 = arith.constant 1.000000e+00 : f32
    %157 = vector.broadcast %cst_64 : f32 to vector<32x32xf32>
    %158 = arith.subf %157, %155 : vector<32x32xf32>
    %159 = arith.mulf %158, %148 : vector<32x32xf32>
    %160 = arith.addf %156, %159 : vector<32x32xf32>
    %cst_65 = arith.constant 9.99999974E-6 : f32
    %161 = vector.broadcast %cst_65 : f32 to vector<32x32xf32>
    %162 = arith.addf %155, %161 : vector<32x32xf32>
    %163 = arith.mulf %126, %162 : vector<32x32xf32>
    %c3 = arith.constant 3 : index
    %c0_66 = arith.constant 0 : index
    %c0_67 = arith.constant 0 : index
    %164 = vector.load %arg11[%c3, %c0_66, %c0_67] : memref<4x32x128xf32, #tpu.memory_space<vmem>>, vector<1x32x128xf32>
    %165 = vector.shape_cast %164 : vector<1x32x128xf32> to vector<32x128xf32>
    %cst_68 = arith.constant dense<0.000000e+00> : vector<32x128xf32>
    %166 = tpu.matmul %160, %165, %cst_68 {dimension_numbers = #tpu.dot_dimension_numbers<[1], [0], [0], [1], [0, 0, 1, 1], [], []>} : vector<32x32xf32>, vector<32x128xf32>, vector<32x128xf32> -> vector<32x128xf32>
    %167 = vector.extract_strided_slice %51 {offsets = [0, 384], sizes = [32, 128], strides = [1, 1]} : vector<32x512xf32> to vector<32x128xf32>
    %168 = arith.addf %166, %167 : vector<32x128xf32>
    %169 = arith.negf %168 : vector<32x128xf32>
    %170 = math.exp %169 : vector<32x128xf32>
    %cst_69 = arith.constant 1.000000e+00 : f32
    %171 = vector.broadcast %cst_69 : f32 to vector<32x128xf32>
    %172 = arith.addf %171, %170 : vector<32x128xf32>
    %173 = arith.divf %171, %172 : vector<32x128xf32>
    %174 = vector.extract_strided_slice %173 {offsets = [0, 0], sizes = [32, 32], strides = [1, 1]} : vector<32x128xf32> to vector<32x32xf32>
    %175 = vector.extract_strided_slice %173 {offsets = [0, 32], sizes = [32, 32], strides = [1, 1]} : vector<32x128xf32> to vector<32x32xf32>
    %176 = vector.extract_strided_slice %173 {offsets = [0, 64], sizes = [32, 32], strides = [1, 1]} : vector<32x128xf32> to vector<32x32xf32>
    %cst_70 = arith.constant 2.000000e+00 : f32
    %177 = vector.broadcast %cst_70 : f32 to vector<32x32xf32>
    %178 = arith.mulf %177, %176 : vector<32x32xf32>
    %cst_71 = arith.constant 1.000000e+00 : f32
    %179 = vector.broadcast %cst_71 : f32 to vector<32x32xf32>
    %180 = arith.subf %178, %179 : vector<32x32xf32>
    %181 = vector.extract_strided_slice %173 {offsets = [0, 96], sizes = [32, 32], strides = [1, 1]} : vector<32x128xf32> to vector<32x32xf32>
    %182 = arith.mulf %174, %180 : vector<32x32xf32>
    %183 = arith.addf %175, %182 : vector<32x32xf32>
    %184 = math.tanh %183 : vector<32x32xf32>
    %185 = arith.mulf %181, %184 : vector<32x32xf32>
    %cst_72 = arith.constant 2.000000e+00 : f32
    %186 = vector.broadcast %cst_72 : f32 to vector<32x32xf32>
    %187 = arith.addf %183, %186 : vector<32x32xf32>
    %188 = arith.negf %187 : vector<32x32xf32>
    %189 = math.exp %188 : vector<32x32xf32>
    %cst_73 = arith.constant 1.000000e+00 : f32
    %190 = vector.broadcast %cst_73 : f32 to vector<32x32xf32>
    %191 = arith.addf %190, %189 : vector<32x32xf32>
    %192 = arith.divf %190, %191 : vector<32x32xf32>
    %193 = arith.mulf %192, %160 : vector<32x32xf32>
    %cst_74 = arith.constant 1.000000e+00 : f32
    %194 = vector.broadcast %cst_74 : f32 to vector<32x32xf32>
    %195 = arith.subf %194, %192 : vector<32x32xf32>
    %196 = arith.mulf %195, %185 : vector<32x32xf32>
    %197 = arith.addf %193, %196 : vector<32x32xf32>
    %cst_75 = arith.constant 9.99999974E-6 : f32
    %198 = vector.broadcast %cst_75 : f32 to vector<32x32xf32>
    %199 = arith.addf %192, %198 : vector<32x32xf32>
    %200 = arith.mulf %163, %199 : vector<32x32xf32>
    %201 = math.log %200 : vector<32x32xf32>
    %202 = arith.subf %46, %201 : vector<32x32xf32>
    %cst_76 = arith.constant 5.000000e-01 : f32
    %203 = vector.broadcast %cst_76 : f32 to vector<32x32xf32>
    %204 = arith.mulf %203, %197 : vector<32x32xf32>
    %205 = arith.mulf %204, %197 : vector<32x32xf32>
    %206 = arith.addf %202, %205 : vector<32x32xf32>
    %cst_77 = arith.constant 0.91629076 : f32
    %207 = vector.broadcast %cst_77 : f32 to vector<32x32xf32>
    %208 = arith.addf %206, %207 : vector<32x32xf32>
    %209 = vector.extract_strided_slice %197 {offsets = [0, 0], sizes = [16, 32], strides = [1, 1]} : vector<32x32xf32> to vector<16x32xf32>
    %cst_78 = arith.constant dense<0.000000e+00> : vector<16x32xf32>
    %210 = tpu.matmul %8, %209, %cst_78 {dimension_numbers = #tpu.dot_dimension_numbers<[1], [0], [0], [1], [0, 0, 1, 1], [], []>} : vector<16x16xf32>, vector<16x32xf32>, vector<16x32xf32> -> vector<16x32xf32>
    %211 = vector.extract_strided_slice %197 {offsets = [16, 0], sizes = [16, 32], strides = [1, 1]} : vector<32x32xf32> to vector<16x32xf32>
    %cst_79 = arith.constant dense<0.000000e+00> : vector<16x32xf32>
    %212 = tpu.matmul %13, %211, %cst_79 {dimension_numbers = #tpu.dot_dimension_numbers<[1], [0], [0], [1], [0, 0, 1, 1], [], []>} : vector<16x16xf32>, vector<16x32xf32>, vector<16x32xf32> -> vector<16x32xf32>
    %213 = tpu.concatenate %210, %212 in 0 : vector<16x32xf32>, vector<16x32xf32> -> vector<32x32xf32>
    %c0_80 = arith.constant 0 : index
    %c0_81 = arith.constant 0 : index
    %214 = vector.load %arg7[%c0_80, %c0_81] : memref<32x1xf32, #tpu.memory_space<vmem>>, vector<32x1xf32>
    %cst_82 = arith.constant dense<0.000000e+00> : vector<32x1xf32>
    %215 = tpu.matmul %213, %214, %cst_82 {dimension_numbers = #tpu.dot_dimension_numbers<[1], [0], [0], [1], [0, 0, 1, 1], [], []>} : vector<32x32xf32>, vector<32x1xf32>, vector<32x1xf32> -> vector<32x1xf32>
    %c0_83 = arith.constant 0 : index
    %c0_84 = arith.constant 0 : index
    %216 = vector.load %arg8[%c0_83, %c0_84] : memref<1x1xf32, #tpu.memory_space<vmem>>, vector<1x1xf32>
    %217 = vector.broadcast %216 : vector<1x1xf32> to vector<32x1xf32>
    %218 = arith.addf %215, %217 : vector<32x1xf32>
    %cst_85 = arith.constant 0.000000e+00 : f32
    %219 = vector.broadcast %cst_85 : f32 to vector<32x1xf32>
    %220 = arith.maximumf %218, %219 : vector<32x1xf32>
    %c0_86 = arith.constant 0 : index
    %c0_87 = arith.constant 0 : index
    %221 = vector.load %arg14[%c0_86, %c0_87] : memref<1x1xf32, #tpu.memory_space<vmem>>, vector<1x1xf32>
    %222 = vector.broadcast %221 : vector<1x1xf32> to vector<32x1xf32>
    %223 = arith.mulf %222, %220 : vector<32x1xf32>
    %224 = arith.negf %223 : vector<32x1xf32>
    %225 = math.exp %224 : vector<32x1xf32>
    %cst_88 = arith.constant 1.000000e+00 : f32
    %226 = vector.broadcast %cst_88 : f32 to vector<32x1xf32>
    %227 = arith.addf %226, %225 : vector<32x1xf32>
    %228 = arith.divf %226, %227 : vector<32x1xf32>
    %229 = vector.extract_strided_slice %228 {offsets = [0, 0], sizes = [16, 1], strides = [1, 1]} : vector<32x1xf32> to vector<16x1xf32>
    %cst_89 = arith.constant dense<0.000000e+00> : vector<16x1xf32>
    %230 = tpu.matmul %8, %229, %cst_89 {dimension_numbers = #tpu.dot_dimension_numbers<[1], [0], [0], [1], [0, 0, 1, 1], [], []>} : vector<16x16xf32>, vector<16x1xf32>, vector<16x1xf32> -> vector<16x1xf32>
    %231 = vector.extract_strided_slice %228 {offsets = [16, 0], sizes = [16, 1], strides = [1, 1]} : vector<32x1xf32> to vector<16x1xf32>
    %cst_90 = arith.constant dense<0.000000e+00> : vector<16x1xf32>
    %232 = tpu.matmul %13, %231, %cst_90 {dimension_numbers = #tpu.dot_dimension_numbers<[1], [0], [0], [1], [0, 0, 1, 1], [], []>} : vector<16x16xf32>, vector<16x1xf32>, vector<16x1xf32> -> vector<16x1xf32>
    %233 = tpu.concatenate %230, %232 in 0 : vector<16x1xf32>, vector<16x1xf32> -> vector<32x1xf32>
    %c0_91 = arith.constant 0 : index
    %c0_92 = arith.constant 0 : index
    %234 = vector.load %arg9[%c0_91, %c0_92] : memref<1x32xf32, #tpu.memory_space<vmem>>, vector<1x32xf32>
    %cst_93 = arith.constant dense<0.000000e+00> : vector<32x32xf32>
    %235 = tpu.matmul %233, %234, %cst_93 {dimension_numbers = #tpu.dot_dimension_numbers<[1], [0], [0], [1], [0, 0, 1, 1], [], []>} : vector<32x1xf32>, vector<1x32xf32>, vector<32x32xf32> -> vector<32x32xf32>
    %c0_94 = arith.constant 0 : index
    %c0_95 = arith.constant 0 : index
    %236 = vector.load %arg10[%c0_94, %c0_95] : memref<1x32xf32, #tpu.memory_space<vmem>>, vector<1x32xf32>
    %237 = vector.broadcast %236 : vector<1x32xf32> to vector<32x32xf32>
    %238 = arith.addf %235, %237 : vector<32x32xf32>
    %cst_96 = arith.constant 0.000000e+00 : f32
    %239 = vector.broadcast %cst_96 : f32 to vector<32x32xf32>
    %240 = arith.maximumf %238, %239 : vector<32x32xf32>
    %241 = vector.broadcast %228 : vector<32x1xf32> to vector<32x32xf32>
    %242 = arith.mulf %30, %241 : vector<32x32xf32>
    %243 = vector.extract_strided_slice %242 {offsets = [0, 0], sizes = [16, 32], strides = [1, 1]} : vector<32x32xf32> to vector<16x32xf32>
    %cst_97 = arith.constant dense<0.000000e+00> : vector<32xf32>
    %244 = vector.multi_reduction <add>, %243, %cst_97 [0] : vector<16x32xf32> to vector<32xf32>
    %245 = vector.shape_cast %244 : vector<32xf32> to vector<1x32xf32>
    %246 = vector.extract_strided_slice %242 {offsets = [16, 0], sizes = [16, 32], strides = [1, 1]} : vector<32x32xf32> to vector<16x32xf32>
    %cst_98 = arith.constant dense<0.000000e+00> : vector<32xf32>
    %247 = vector.multi_reduction <add>, %246, %cst_98 [0] : vector<16x32xf32> to vector<32xf32>
    %248 = vector.shape_cast %247 : vector<32xf32> to vector<1x32xf32>
    %249 = tpu.concatenate %245, %248 in 0 : vector<1x32xf32>, vector<1x32xf32> -> vector<2x32xf32>
    %c0_99 = arith.constant 0 : index
    %c0_100 = arith.constant 0 : index
    %250 = vector.load %arg15[%c0_99, %c0_100] : memref<32x32xf32, #tpu.memory_space<vmem>>, vector<32x32xf32>
    %cst_101 = arith.constant dense<0.000000e+00> : vector<2x32xf32>
    %251 = tpu.matmul %249, %250, %cst_101 {dimension_numbers = #tpu.dot_dimension_numbers<[1], [0], [0], [1], [0, 0, 1, 1], [], []>} : vector<2x32xf32>, vector<32x32xf32>, vector<2x32xf32> -> vector<2x32xf32>
    %c0_102 = arith.constant 0 : index
    %c0_103 = arith.constant 0 : index
    %252 = vector.load %arg16[%c0_102, %c0_103] : memref<1x32xf32, #tpu.memory_space<vmem>>, vector<1x32xf32>
    %253 = vector.broadcast %252 : vector<1x32xf32> to vector<2x32xf32>
    %254 = arith.addf %251, %253 : vector<2x32xf32>
    %cst_104 = arith.constant 0.000000e+00 : f32
    %255 = vector.broadcast %cst_104 : f32 to vector<2x32xf32>
    %256 = arith.maximumf %254, %255 : vector<2x32xf32>
    %c0_105 = arith.constant 0 : index
    %c0_106 = arith.constant 0 : index
    %257 = vector.load %arg17[%c0_105, %c0_106] : memref<32x4xf32, #tpu.memory_space<vmem>>, vector<32x4xf32>
    %cst_107 = arith.constant dense<0.000000e+00> : vector<2x4xf32>
    %258 = tpu.matmul %256, %257, %cst_107 {dimension_numbers = #tpu.dot_dimension_numbers<[1], [0], [0], [1], [0, 0, 1, 1], [], []>} : vector<2x32xf32>, vector<32x4xf32>, vector<2x4xf32> -> vector<2x4xf32>
    %c0_108 = arith.constant 0 : index
    %c0_109 = arith.constant 0 : index
    %259 = vector.load %arg18[%c0_108, %c0_109] : memref<1x4xf32, #tpu.memory_space<vmem>>, vector<1x4xf32>
    %260 = vector.broadcast %259 : vector<1x4xf32> to vector<2x4xf32>
    %261 = arith.addf %258, %260 : vector<2x4xf32>
    %cst_110 = arith.constant dense<0xFF800000> : vector<2xf32>
    %262 = vector.multi_reduction <maximumf>, %261, %cst_110 [1] : vector<2x4xf32> to vector<2xf32>
    %263 = vector.shape_cast %262 : vector<2xf32> to vector<2x1xf32>
    %264 = vector.broadcast %263 : vector<2x1xf32> to vector<2x4xf32>
    %265 = arith.subf %261, %264 : vector<2x4xf32>
    %266 = math.exp %265 : vector<2x4xf32>
    %cst_111 = arith.constant dense<0.000000e+00> : vector<2xf32>
    %267 = vector.multi_reduction <add>, %266, %cst_111 [1] : vector<2x4xf32> to vector<2xf32>
    %268 = vector.shape_cast %267 : vector<2xf32> to vector<2x1xf32>
    %269 = math.log %268 : vector<2x1xf32>
    %270 = arith.addf %269, %263 : vector<2x1xf32>
    %271 = vector.broadcast %270 : vector<2x1xf32> to vector<2x4xf32>
    %272 = arith.subf %261, %271 : vector<2x4xf32>
    %c0_112 = arith.constant 0 : index
    %c0_113 = arith.constant 0 : index
    %273 = vector.load %arg2[%c0_112, %c0_113] : memref<2x1xf32, #tpu.memory_space<vmem>>, vector<2x1xf32>
    %274 = tpu.iota {dimensions = array<i32: 1>} : vector<2x4xi32>
    %275 = arith.sitofp %274 : vector<2x4xi32> to vector<2x4xf32>
    %276 = vector.broadcast %273 : vector<2x1xf32> to vector<2x4xf32>
    %277 = arith.cmpf oeq, %275, %276 : vector<2x4xf32>
    %278 = arith.extui %277 : vector<2x4xi1> to vector<2x4xi32>
    %279 = arith.sitofp %278 : vector<2x4xi32> to vector<2x4xf32>
    %280 = arith.mulf %279, %272 : vector<2x4xf32>
    %cst_114 = arith.constant dense<0.000000e+00> : vector<2xf32>
    %281 = vector.multi_reduction <add>, %280, %cst_114 [1] : vector<2x4xf32> to vector<2xf32>
    %282 = vector.shape_cast %281 : vector<2xf32> to vector<2x1xf32>
    %cst_115 = arith.constant dense<0.000000e+00> : vector<1xf32>
    %283 = vector.multi_reduction <add>, %282, %cst_115 [0] : vector<2x1xf32> to vector<1xf32>
    %284 = vector.shape_cast %283 : vector<1xf32> to vector<1x1xf32>
    %cst_116 = arith.constant 0.000000e+00 : f32
    %285 = vector.broadcast %cst_116 : f32 to vector<1x1xf32>
    %286 = arith.subf %285, %284 : vector<1x1xf32>
    %cst_117 = arith.constant 5.000000e-01 : f32
    %287 = vector.broadcast %cst_117 : f32 to vector<1x1xf32>
    %288 = arith.mulf %286, %287 : vector<1x1xf32>
    %289 = arith.subf %30, %240 : vector<32x32xf32>
    %290 = arith.mulf %289, %289 : vector<32x32xf32>
    %cst_118 = arith.constant dense<0.000000e+00> : vector<32xf32>
    %291 = vector.multi_reduction <add>, %290, %cst_118 [1] : vector<32x32xf32> to vector<32xf32>
    %292 = vector.shape_cast %291 : vector<32xf32> to vector<32x1xf32>
    %cst_119 = arith.constant dense<0.000000e+00> : vector<1xf32>
    %293 = vector.multi_reduction <add>, %292, %cst_119 [0] : vector<32x1xf32> to vector<1xf32>
    %294 = vector.shape_cast %293 : vector<1xf32> to vector<1x1xf32>
    %cst_120 = arith.constant 9.765625E-4 : f32
    %295 = vector.broadcast %cst_120 : f32 to vector<1x1xf32>
    %296 = arith.mulf %294, %295 : vector<1x1xf32>
    %cst_121 = arith.constant dense<0.000000e+00> : vector<32xf32>
    %297 = vector.multi_reduction <add>, %208, %cst_121 [1] : vector<32x32xf32> to vector<32xf32>
    %298 = vector.shape_cast %297 : vector<32xf32> to vector<32x1xf32>
    %cst_122 = arith.constant dense<0.000000e+00> : vector<1xf32>
    %299 = vector.multi_reduction <add>, %298, %cst_122 [0] : vector<32x1xf32> to vector<1xf32>
    %300 = vector.shape_cast %299 : vector<1xf32> to vector<1x1xf32>
    %cst_123 = arith.constant 9.765625E-4 : f32
    %301 = vector.broadcast %cst_123 : f32 to vector<1x1xf32>
    %302 = arith.mulf %300, %301 : vector<1x1xf32>
    %303 = vector.broadcast %263 : vector<2x1xf32> to vector<2x4xf32>
    %304 = arith.cmpf oge, %261, %303 : vector<2x4xf32>
    %cst_124 = arith.constant 4.000000e+00 : f32
    %305 = vector.broadcast %cst_124 : f32 to vector<2x4xf32>
    %306 = arith.select %304, %275, %305 : vector<2x4xi1>, vector<2x4xf32>
    %cst_125 = arith.constant dense<0x7F800000> : vector<2xf32>
    %307 = vector.multi_reduction <minimumf>, %306, %cst_125 [1] : vector<2x4xf32> to vector<2xf32>
    %308 = vector.shape_cast %307 : vector<2xf32> to vector<2x1xf32>
    %309 = arith.cmpf oeq, %308, %273 : vector<2x1xf32>
    %310 = arith.extui %309 : vector<2x1xi1> to vector<2x1xi32>
    %311 = arith.sitofp %310 : vector<2x1xi32> to vector<2x1xf32>
    %312 = arith.addf %288, %296 : vector<1x1xf32>
    %313 = arith.addf %312, %302 : vector<1x1xf32>
    %c0_126 = arith.constant 0 : index
    %c0_127 = arith.constant 0 : index
    %314 = vector.load %arg19[%c0_126, %c0_127] : memref<1x1xf32, #tpu.memory_space<vmem>>, vector<1x1xf32>
    tpu.vector_store %arg19[%c0_126, %c0_127], %313 {strides = array<i32>} : memref<1x1xf32, #tpu.memory_space<vmem>>, vector<1x1xf32>,
    %cst_128 = arith.constant dense<0.000000e+00> : vector<1xf32>
    %315 = vector.multi_reduction <add>, %311, %cst_128 [0] : vector<2x1xf32> to vector<1xf32>
    %316 = vector.shape_cast %315 : vector<1xf32> to vector<1x1xf32>
    %cst_129 = arith.constant 5.000000e-01 : f32
    %317 = vector.broadcast %cst_129 : f32 to vector<1x1xf32>
    %318 = arith.mulf %316, %317 : vector<1x1xf32>
    %c0_130 = arith.constant 0 : index
    %c0_131 = arith.constant 0 : index
    %319 = vector.load %arg20[%c0_130, %c0_131] : memref<1x1xf32, #tpu.memory_space<vmem>>, vector<1x1xf32>
    tpu.vector_store %arg20[%c0_130, %c0_131], %318 {strides = array<i32>} : memref<1x1xf32, #tpu.memory_space<vmem>>, vector<1x1xf32>,
    return
  }
}

</mosaic_0001>

<bundles_post_ra>
// kernel: tpu_custom_call.1
= control target key start
LH: loop header
LB: loop body
LE: loop exit
PB: predicated region body
PF: predicated region fallthrough
CT: control target
= control target key end

     0   :  { %s4770_s0 = inlined_call_operand.vmem [shape: f32[2,16,16], index: 0, kind: input, shape index: {}]   ;;  %s4771_s1 = inlined_call_operand.vmem [shape: f32[2,16,8], index: 1, kind: input, shape index: {}]   ;;  %s4772_s2 = inlined_call_operand.vmem [shape: f32[2,1], index: 2, kind: input, shape index: {}]   ;;  %s4773_s3 = inlined_call_operand.hbm [shape: f32[8,32], index: 3, kind: input, shape index: {}]   ;;  %s4774_s4 = inlined_call_operand.vmem [shape: f32[1,32], index: 4, kind: input, shape index: {}]   ;;  %s4775_s5 = inlined_call_operand.hbm [shape: f32[32,64], index: 5, kind: input, shape index: {}]   ;;  %s4776_s6 = inlined_call_operand.vmem [shape: f32[1,64], index: 6, kind: input, shape index: {}]   ;;  %s4777_s7 = inlined_call_operand.vmem [shape: f32[32,1], index: 7, kind: input, shape index: {}]   ;;  %s4778_s8 = inlined_call_operand.<no memory space> [shape: f32[1,1], index: 8, kind: input, shape index: {}]   ;;  %s4779_s9 = inlined_call_operand.hbm [shape: f32[1,32], index: 9, kind: input, shape index: {}]   ;;  %s4780_s10 = inlined_call_operand.hbm [shape: f32[1,32], index: 10, kind: input, shape index: {}]   ;;  %s4781_s11 = inlined_call_operand.vmem [shape: f32[4,32,128], index: 11, kind: input, shape index: {}]   ;;  %s4782_s12 = inlined_call_operand.hbm [shape: f32[32,512], index: 12, kind: input, shape index: {}]   ;;  %s4783_s13 = inlined_call_operand.vmem [shape: f32[1,512], index: 13, kind: input, shape index: {}]   ;;  %s4784_s15 = inlined_call_operand.hbm [shape: f32[32,32], index: 15, kind: input, shape index: {}]   ;;  %s4785_s16 = inlined_call_operand.vmem [shape: f32[1,32], index: 16, kind: input, shape index: {}]   ;;  %s4786_s17 = inlined_call_operand.vmem [shape: f32[32,4], index: 17, kind: input, shape index: {}]   ;;  %s4787_s18 = inlined_call_operand.vmem [shape: f32[1,4], index: 18, kind: input, shape index: {}]   ;;  %s4788_s19 = inlined_call_operand.hbm [shape: f32[1,1], index: 19, kind: output, shape index: {0}]   ;;  %s4789_s20 = inlined_call_operand.hbm [shape: f32[1,1], index: 20, kind: output, shape index: {1}]   ;;  %s4790_s14 = inlined_call_operand.<no memory space> [shape: f32[1,1], index: 14, kind: input, shape index: {}]  }
   0x1   :  { %4794 = sst [smem:[#allocation24_spill]] %s4770_s0  ;;  %v26_v0 = vstv %s4778_s8  ;;  %v28_v1 = vstv %s4790_s14 }
   0x2   :  { %4795 = sst [smem:[#allocation25_spill]] %s4771_s1  ;;  %27 = vst [vmem:[#allocation2] sm:$0x1] %v26_v0  ;;  %29 = vst [vmem:[#allocation3] sm:$0x1] %v28_v1 }
   0x3   :  { %4796 = sst [smem:[#allocation26_spill]] %s4772_s2 }
   0x4   :  { %4797 = sst [smem:[#allocation27_spill]] %s4773_s3 }
   0x5   :  { %4798 = sst [smem:[#allocation28_spill]] %s4774_s4 }
   0x6   :  { %30 = vsyncpa [#allocation5], 0 }
   0x7   :  { %31 = vsyncpa [#allocation8], 0 }
   0x8   :  { %32 = vsyncpa [#allocation11], 0 }
   0x9   :  { %33 = vsyncpa [#allocation14], 0 }
   0xa   :  { %34 = vsyncpa [#allocation6], 0 }
   0xb   :  { %35 = vsyncpa [#allocation17], 0  ;;  %s3943_s2 = smov [#allocation7]   ;;  %s3755_s27 = scalar_lea.hbm %s4775_s5, 512 }
   0xc   :  { %s59_s25 = sshll.u32 %s3943_s2, 4  ;;  %p3756_p0 = scmp.ne.s32.totalorder %s4775_s5, %s3755_s27  ;;  %s60_s25 = int_to_ptr.vmem [resolvable:$true] %s59_s25 }
   0xd   :  { %p3759_p1 = scmp.lt.u32.totalorder %s3755_s27, %s4775_s5 }
   0xf   :  { %p3761_p2 = pnand %p3759_p1, %p3756_p0 }
  0x11   :  { %3764 = shalt.err (!%p3761_p2)
}
  0x12   :  { %s3765_s29 = scalar_lea.vmem %s60_s25, 512  ;;  %p3770_p4 = scmp.lt.s32.totalorder %s60_s25, %s60_s25 }
  0x13   :  { %p3766_p3 = scmp.ne.s32.totalorder %s60_s25, %s3765_s29  ;;  %p3771_p5 = scmp.lt.s32.totalorder %s3765_s29, %s3765_s29 }
  0x15   :  { %p3772_p6 = por %p3771_p5, %p3770_p4 }
  0x17   :  { %p3773_p7 = pnand %p3772_p6, %p3766_p3 }
  0x19   :  { %3776 = shalt.err (!%p3773_p7)
}
  0x1a   :  { %s3944_s30 = smov 128   ;;  %s3945_s0 = smov 8  }
  0x1b   :  { %65 = dma.hbm_to_vmem [thread:$0]  %s4775_s5, 512, %s60_s25, [#allocation8], %s3944_s30, %s3944_s30, %s3945_s0  }
  0x1c   :  { %s3946_s22 = smov [#allocation10]   ;;  %s3947_s24 = smov [#allocation4]  }
  0x1d   :  { %s88_s23 = sshll.u32 %s3946_s22, 4  ;;  %s48_s2 = sshll.u32 %s3947_s24, 4  ;;  %s89_s23 = int_to_ptr.vmem [resolvable:$true] %s88_s23  ;;  %s49_s2 = int_to_ptr.vmem [resolvable:$true] %s48_s2 }
  0x1e   :  { %s3777_s27 = scalar_lea.hbm %s4780_s10, 16 }
  0x1f   :  { %p3778_p8 = scmp.ne.s32.totalorder %s4780_s10, %s3777_s27  ;;  %p3781_p9 = scmp.lt.u32.totalorder %s3777_s27, %s4780_s10 }
  0x21   :  { %p3783_p10 = pnand %p3781_p9, %p3778_p8 }
  0x23   :  { %3786 = shalt.err (!%p3783_p10)
}
  0x24   :  { %s3787_s5 = scalar_lea.vmem %s89_s23, 16  ;;  %s3791_s25 = scalar_lea.vmem %s89_s23, 32 }
  0x25   :  { %p3788_p11 = scmp.ne.s32.totalorder %s89_s23, %s3787_s5  ;;  %p3792_p12 = scmp.lt.s32.totalorder %s89_s23, %s89_s23 }
  0x26   :  { %p3793_p13 = scmp.lt.s32.totalorder %s3791_s25, %s3787_s5 }
  0x28   :  { %p3794_p0 = por %p3793_p13, %p3792_p12 }
  0x2a   :  { %p3795_p1 = pnand %p3794_p0, %p3788_p11 }
  0x2c   :  { %3798 = shalt.err (!%p3795_p1)
}
  0x2d   :  { %91 = dma.hbm_to_vmem [thread:$0]  %s4780_s10, 16, %s89_s23, [#allocation11]  }
  0x2e   :  { %s4799_s24 = sld [smem:[#allocation27_spill]] }
  0x34   :  { %s3799_s3 = scalar_lea.hbm %s4799_s24, 128 }
  0x35   :  { %p3800_p2 = scmp.ne.s32.totalorder %s4799_s24, %s3799_s3  ;;  %p3803_p3 = scmp.lt.u32.totalorder %s3799_s3, %s4799_s24 }
  0x37   :  { %p3805_p4 = pnand %p3803_p3, %p3800_p2 }
  0x39   :  { %3808 = shalt.err (!%p3805_p4)
}
  0x3a   :  { %s3809_s14 = scalar_lea.vmem %s49_s2, 128  ;;  %p3814_p6 = scmp.lt.s32.totalorder %s49_s2, %s49_s2 }
  0x3b   :  { %p3810_p5 = scmp.ne.s32.totalorder %s49_s2, %s3809_s14  ;;  %p3815_p7 = scmp.lt.s32.totalorder %s3809_s14, %s3809_s14 }
  0x3d   :  { %p3816_p8 = por %p3815_p7, %p3814_p6 }
  0x3f   :  { %p3817_p9 = pnand %p3816_p8, %p3810_p5 }
  0x41   :  { %3820 = shalt.err (!%p3817_p9)
}
  0x42   :  { %51 = dma.hbm_to_vmem [thread:$0]  %s4799_s24, 128, %s49_s2, [#allocation5]  }
  0x43   :  { %s3948_s4 = smov [#allocation9]   ;;  %s3949_s25 = smov [#allocation12]  }
  0x44   :  { %s78_s5 = sshll.u32 %s3948_s4, 4  ;;  %s99_s29 = sshll.u32 %s3949_s25, 4  ;;  %s79_s5 = int_to_ptr.vmem [resolvable:$true] %s78_s5  ;;  %s100_s29 = int_to_ptr.vmem [resolvable:$true] %s99_s29 }
  0x45   :  { %s3821_s22 = scalar_lea.hbm %s4779_s9, 16 }
  0x46   :  { %p3822_p10 = scmp.ne.s32.totalorder %s4779_s9, %s3821_s22  ;;  %p3825_p11 = scmp.lt.u32.totalorder %s3821_s22, %s4779_s9 }
  0x48   :  { %p3827_p12 = pnand %p3825_p11, %p3822_p10 }
  0x4a   :  { %3830 = shalt.err (!%p3827_p12)
}
  0x4b   :  { %s3831_s2 = scalar_lea.vmem %s79_s5, 16  ;;  %s3835_s24 = scalar_lea.vmem %s79_s5, 32 }
  0x4c   :  { %p3832_p13 = scmp.ne.s32.totalorder %s79_s5, %s3831_s2  ;;  %p3836_p0 = scmp.lt.s32.totalorder %s79_s5, %s79_s5 }
  0x4d   :  { %p3837_p1 = scmp.lt.s32.totalorder %s3835_s24, %s3831_s2 }
  0x4f   :  { %p3838_p2 = por %p3837_p1, %p3836_p0 }
  0x51   :  { %p3839_p3 = pnand %p3838_p2, %p3832_p13 }
  0x53   :  { %3842 = shalt.err (!%p3839_p3)
}
  0x54   :  { %81 = dma.hbm_to_vmem [thread:$0]  %s4779_s9, 16, %s79_s5, [#allocation8]  }
  0x55   :  { %s3843_s4 = scalar_lea.hbm %s4782_s12, 2048 }
  0x56   :  { %p3844_p4 = scmp.ne.s32.totalorder %s4782_s12, %s3843_s4  ;;  %p3847_p5 = scmp.lt.u32.totalorder %s3843_s4, %s4782_s12 }
  0x58   :  { %p3849_p6 = pnand %p3847_p5, %p3844_p4 }
  0x5a   :  { %3852 = shalt.err (!%p3849_p6)
}
  0x5b   :  { %s3853_s3 = scalar_lea.vmem %s100_s29, 2048  ;;  %p3858_p8 = scmp.lt.s32.totalorder %s100_s29, %s100_s29 }
  0x5c   :  { %p3854_p7 = scmp.ne.s32.totalorder %s100_s29, %s3853_s3  ;;  %p3859_p9 = scmp.lt.s32.totalorder %s3853_s3, %s3853_s3 }
  0x5e   :  { %p3860_p10 = por %p3859_p9, %p3858_p8 }
  0x60   :  { %p3861_p11 = pnand %p3860_p10, %p3854_p7 }
  0x62   :  { %3864 = shalt.err (!%p3861_p11)
}
  0x63   :  { %s3950_s9 = smov 512   ;;  %s3951_s5 = smov 32  }
  0x64   :  { %105 = dma.hbm_to_vmem [thread:$0]  %s4782_s12, 2048, %s100_s29, [#allocation11], %s3950_s9, %s3950_s9, %s3951_s5  }
  0x65   :  { %s3952_s8 = smov [#allocation13]   ;;  %s3865_s14 = scalar_lea.hbm %s4784_s15, 512 }
  0x66   :  { %s115_s2 = sshll.u32 %s3952_s8, 4  ;;  %p3866_p12 = scmp.ne.s32.totalorder %s4784_s15, %s3865_s14  ;;  %s116_s2 = int_to_ptr.vmem [resolvable:$true] %s115_s2 }
  0x67   :  { %p3869_p13 = scmp.lt.u32.totalorder %s3865_s14, %s4784_s15 }
  0x69   :  { %p3871_p0 = pnand %p3869_p13, %p3866_p12 }
  0x6b   :  { %3874 = shalt.err (!%p3871_p0)
}
  0x6c   :  { %s3875_s21 = scalar_lea.vmem %s116_s2, 512  ;;  %p3880_p2 = scmp.lt.s32.totalorder %s116_s2, %s116_s2 }
  0x6d   :  { %p3876_p1 = scmp.ne.s32.totalorder %s116_s2, %s3875_s21  ;;  %p3881_p3 = scmp.lt.s32.totalorder %s3875_s21, %s3875_s21 }
  0x6f   :  { %p3882_p4 = por %p3881_p3, %p3880_p2 }
  0x71   :  { %p3883_p5 = pnand %p3882_p4, %p3876_p1 }
  0x73   :  { %3886 = shalt.err (!%p3883_p5)
}
  0x74   :  { %121 = dma.hbm_to_vmem [thread:$0]  %s4784_s15, 512, %s116_s2, [#allocation14], %s3944_s30, %s3944_s30, %s3945_s0  }
  0x75   :  { %3931 = dma.done.wait [#allocation5], 128  }
  0x76   :  { %3932 = vsyncadd [#allocation5], 4294967168 }
  0x77   :  { %3933 = dma.done.wait [#allocation8], 528  }
  0x78   :  { %3934 = vsyncadd [#allocation8], 4294966768 }
  0x79   :  { %3935 = dma.done.wait [#allocation11], 2064  }
  0x7a   :  { %3936 = vsyncadd [#allocation11], 4294965232 }
  0x7b   :  { %3937 = dma.done.wait [#allocation14], 512  }
  0x7c   :  { %3938 = vsyncadd [#allocation14], 4294966784  ;;  %vm151_vm0 = vcmask 130048   ;;  %s4800_s3 = sld [smem:[#allocation24_spill]]  ;;  %s4801_s24 = sld [smem:[#allocation25_spill]]  ;;  %v339_v28 = vld [vmem:[#allocation4] sm:$0xff] }
  0x7d   :  { %3256 = vmatprep.subr.mxu0 %v339_v28  ;;  %vm347_vm1 = vcmask 64512   ;;  %v599_v33 = vld [vmem:[#allocation7] sm:$0xff]  ;;  %v600_v34 = vld [vmem:[#allocation7 + $0x8] sm:$0xff]  ;;  %v601_v35 = vld [vmem:[#allocation7 + $0x10] sm:$0xff]  ;;  %s4802_s29 = sld [smem:[#allocation28_spill]]  ;;  %vm610_vm2 = vcmask 261120  }
  0x7e   :  { %3257 = vmatpush3.msra.mxu0 %v339_v28  ;;  %v3436_v36 = vpack.c.bf16 %v600_v34, %v599_v33  ;;  %v602_v37 = vld [vmem:[#allocation7 + $0x18] sm:$0xff]  ;;  %v717_v54 = vld [vmem:[#allocation12 + $0x8] sm:$0xff]  ;;  %v716_v59 = vld [vmem:[#allocation12] sm:$0xff]  ;;  %vm3958_vm3 = vmmov 0   ;;  %vm2539_vm4 = vcmask 1040384   ;;  %vm2526_vm5 = vcmask 7168  }
  0x7f   :  { %v3440_v38 = vpack.c.bf16 %v602_v37, %v601_v35  ;;  %v721_v55 = vld [vmem:[#allocation12 + $0x28] sm:$0xff]  ;;  %v719_v56 = vld [vmem:[#allocation12 + $0x18] sm:$0xff]  ;;  %v720_v60 = vld [vmem:[#allocation12 + $0x20] sm:$0xff]  ;;  %vm2844_vm6 = vcmask 25600   ;;  %s4803_s28 = sld [smem:[#allocation26_spill]]  ;;  %vm2874_vm9 = vcmask 1041408  }
  0x80   :  { %3437 = vmatprep.subr.bf16.mxu0 %v3436_v36  ;;  %v3444_v57 = vpack.c.bf16 %v721_v55, %v717_v54  ;;  %v723_v58 = vld [vmem:[#allocation12 + $0x38] sm:$0xff]  ;;  %v3446_v62 = vpack.c.bf16 %v720_v60, %v716_v59  ;;  %v718_v63 = vld [vmem:[#allocation12 + $0x10] sm:$0xff]  ;;  %vm2964_vm10 = vcmask 1024   ;;  %s3960_s10 = smov [#allocation16]   ;;  %vm2962_vm12 = vcmask 0  }
  0x81   :  { %v3452_v61 = vpack.c.bf16 %v723_v58, %v719_v56  ;;  %v722_v0 = vld [vmem:[#allocation12 + $0x30] sm:$0xff]  ;;  %s2990_s23 = sshll.u32 %s3960_s10, 4  ;;  %s4738_s23 = int_to_ptr.vmem [resolvable:$true] %s2990_s23 }
  0x82   :  { %v146_v2 = vld [vmem:[%s4800_s3] sm:$0xff]  ;;  %v3006_v3 = vld [vmem:[%s4800_s3 + $0x10] sm:$0xff]  ;;  %v147_v4 = vld [vmem:[%s4800_s3 + $0x8] sm:$0xff] }
  0x83   :  { %v152_v5 = vsel %vm151_vm0, %v146_v2, 0.0  ;;  %v162_v6 = vsel %vm151_vm0, %v3006_v3, 0.0  ;;  %v3007_v7 = vld [vmem:[%s4800_s3 + $0x18] sm:$0xff]  ;;  %v155_v8 = vsel %vm151_vm0, %v147_v4, 0.0  ;;  %v172_v10 = vld [vmem:[%s4801_s24] sm:$0xff]  ;;  %v173_v11 = vld [vmem:[%s4801_s24 + $0x8] sm:$0xff] }
  0x84   :  { %153 = vadd.xlane.f32.xlu0 %v152_v5  ;;  %163 = vadd.xlane.f32.xlu1 %v162_v6  ;;  %v165_v9 = vsel %vm151_vm0, %v3007_v7, 0.0  ;;  %v3420_v12 = vpack.c.bf16 %v173_v11, %v172_v10  ;;  %v3008_v13 = vld [vmem:[%s4801_s24 + $0x10] sm:$0xff]  ;;  %v3009_v14 = vld [vmem:[%s4801_s24 + $0x18] sm:$0xff]  ;;  %v3014_v39 = vld [vmem:[%s4802_s29] ss:$0 sm:$0xff]  ;;  %s3954_s24 = smov 64  }
  0x85   :  { %v3424_v15 = vpack.c.bf16 %v3009_v14, %v3008_v13  ;;  %v725_v6 = vld [vmem:[#allocation12 + $0x48] sm:$0xff]  ;;  %v731_v10 = vld [vmem:[#allocation12 + $0x78] sm:$0xff]  ;;  %v724_v11 = vld [vmem:[#allocation12 + $0x40] sm:$0xff]  ;;  %s3955_s29 = smov 96  }
  0x86   :  { %3421 = vmatprep.subr.bf16.mxu1 %v3420_v12  ;;  %v728_v13 = vld [vmem:[#allocation12 + $0x60] sm:$0xff]  ;;  %v726_v14 = vld [vmem:[#allocation12 + $0x50] sm:$0xff] }
  0x87   :  { %3423 = vmatpush3.bf16.msra.mxu1 %v3420_v12  ;;  %v4298_v59 = vld [vmem:[%s4783_s13] sm:$0xf] }
  0x88   :  { %156 = vadd.xlane.f32.xlu0 %v155_v8  ;;  %166 = vadd.xlane.f32.xlu1 %v165_v9  ;;  %v727_v8 = vld [vmem:[#allocation12 + $0x58] sm:$0xff] }
  0x89   :  { %3425 = vmatprep.subr.bf16.mxu1 %v3424_v15  ;;  %v3456_v12 = vpack.c.bf16 %v731_v10, %v727_v8 }
 0x111   :  { %v154_v16 = vpop.xlane.xlu0 %153  ;;  %v164_v17 = vpop.xlane.xlu1 %163 }
 0x112   :  { %3558 = vrcp.f32 %v154_v16  ;;  %v3450_v16 = vpack.c.bf16 %v728_v13, %v724_v11 }
 0x113   :  { %3560 = vrcp.f32 %v164_v17 }
 0x115   :  { %v157_v18 = vpop.xlane.xlu0 %156  ;;  %v167_v19 = vpop.xlane.xlu1 %166 }
 0x116   :  { %3562 = vrcp.f32 %v157_v18  ;;  %v3953_v18 = vmov 0.0  }
 0x117   :  { %3564 = vrcp.f32 %v167_v19  ;;  %v944_v19 = vld [vmem:[%s4781_s11] sm:$0xff] }
 0x11c   :  { %v3559_v20 = vpop.eup %3558 }
 0x11d   :  { %v3561_v21 = vpop.eup %3560  ;;  %v4179_v22 = vmul.f32 %v3559_v20, %v146_v2  ;;  %v3454_v2 = vpack.c.bf16 %v722_v0, %v718_v63  ;;  %v945_v20 = vld [vmem:[%s4781_s11 + $0x8] sm:$0xff] }
 0x11e   :  { %v4183_v24 = vmul.f32 %v3561_v21, %v3006_v3  ;;  %v3460_v21 = vpack.c.bf16 %v945_v20, %v944_v19 }
 0x11f   :  { %3246 = vmatprep.mubr.msk.f32.mxu1 %vm151_vm0, %v4179_v22 }
 0x120   :  { %v3563_v23 = vpop.eup %3562 }
 0x121   :  { %v3565_v25 = vpop.eup %3564  ;;  %v4185_v26 = vmul.f32 %v3563_v23, %v147_v4  ;;  %v3023_v23 = vld [vmem:[%s4776_s6] ss:$0 sm:$0xff] }
 0x122   :  { %v4189_v27 = vmul.f32 %v3565_v25, %v3007_v7  ;;  %v729_v7 = vld [vmem:[#allocation12 + $0x68] sm:$0xff] }
 0x123   :  { %3247 = vmatmul.mubr.msk.f32.vlgmr.msra.gmra.mrb[0].mxu1 %vm151_vm0, %v4185_v26  ;;  %v3448_v9 = vpack.c.bf16 %v729_v7, %v725_v6 }
 0x124   :  { %3427 = vmatpush3.bf16.msra.mxu1 %v3424_v15  ;;  %3253 = vmatprep.mubr.msk.f32.mxu1 %vm151_vm0, %v4183_v24  ;;  %v730_v15 = vld [vmem:[#allocation12 + $0x70] sm:$0xff] }
 0x125   :  { %v3458_v17 = vpack.c.bf16 %v730_v15, %v726_v14 }
 0x127   :  { %3254 = vmatmul.mubr.msk.f32.vlgmr.msra.gmra.mrb[2].mxu1 %vm151_vm0, %v4189_v27 }
 0x128   :  { %3268 = vmatprep.mubr.msk.f32.mxu1 %vm151_vm0, %v4179_v22 }
 0x1f6   :  { %v3248_v29 = vpop.f32.mrb[0].mxu1 }
 0x1f7   :  { %v249_v30 = vpop.f32.mrb[1].mxu1 }
 0x1f8   :  { %3258 = vmatprep.mubr.msk.f32.mxu0 %vm347_vm1, %v249_v30  ;;  %v946_v30 = vld [vmem:[%s4781_s11 + $0x10] sm:$0xff] }
 0x1f9   :  { %3259 = vmatmul.mubr.msk.f32.vlgmr.msra.gmra.mrb[0].mxu0 %vm347_vm1, %v3248_v29 }
 0x1fa   :  { %v3255_v31 = vpop.f32.mrb[2].mxu1  ;;  %3439 = vmatpush3.bf16.msra.mxu0 %v3436_v36 }
 0x1fb   :  { %v330_v32 = vpop.f32.mrb[3].mxu1  ;;  %3441 = vmatprep.subr.bf16.mxu0 %v3440_v38 }
 0x1fc   :  { %3261 = vmatprep.mubr.msk.f32.mxu0 %vm347_vm1, %v330_v32 }
 0x1fd   :  { %3262 = vmatmul.mubr.msk.f32.gmra.mrb[2].mxu0 %vm347_vm1, %v3255_v31  ;;  %v947_v31 = vld [vmem:[%s4781_s11 + $0x18] sm:$0xff] }
 0x1fe   :  { %3443 = vmatpush3.bf16.msra.mxu0 %v3440_v38  ;;  %v3464_v36 = vpack.c.bf16 %v947_v31, %v946_v30 }
 0x1ff   :  { %3453 = vmatprep.subr.bf16.mxu0 %v3452_v61 }
 0x2cc   :  { %v3260_v40 = vpop.f32.mrb[0].mxu0 }
 0x2cd   :  { %v432_v41 = vadd.f32 %v3260_v40, %v3014_v39  ;;  %v426_v42 = vpop.f32.mrb[1].mxu0 }
 0x2ce   :  { %v427_v43 = vadd.f32 %v3014_v39, %v426_v42  ;;  %v734_v42 = vlaneseq }
 0x2cf   :  { %v4200_v44 = vmax.f32 %v432_v41, 0.0 }
 0x2d0   :  { %v4202_v45 = vmax.f32 %v427_v43, 0.0  ;;  %v3263_v46 = vpop.f32.mrb[2].mxu0 }
 0x2d1   :  { %v442_v47 = vadd.f32 %v3263_v46, %v3014_v39  ;;  %v436_v48 = vpop.f32.mrb[3].mxu0 }
 0x2d2   :  { %v437_v49 = vadd.f32 %v3014_v39, %v436_v48  ;;  %v3428_v50 = vpack.c.bf16 %v4200_v44, %v4202_v45 }
 0x2d3   :  { %v4206_v51 = vmax.f32 %v442_v47, 0.0 }
 0x2d4   :  { %v4208_v52 = vmax.f32 %v437_v49, 0.0  ;;  %3429 = vmatprep.subr.bf16.mxu1 %v3428_v50  ;;  %v4284_v49 = vshrl.u32 %v734_v42, 7 }
 0x2d5   :  { %3431 = vmatpush3.bf16.msra.mxu1 %v3428_v50 }
 0x2d6   :  { %v3432_v53 = vpack.c.bf16 %v4206_v51, %v4208_v52  ;;  %v736_v56 = vsub.s32 0, %v4284_v49 }
 0x2d8   :  { %3269 = vmatmul.mubr.msk.f32.vlgmr.msra.gmra.mrb[4].mxu1 %vm151_vm0, %v4185_v26  ;;  %3433 = vmatprep.subr.bf16.mxu1 %v3432_v53 }
 0x2d9   :  { %3435 = vmatpush3.bf16.msra.mxu1 %v3432_v53  ;;  %3275 = vmatprep.mubr.msk.f32.mxu1 %vm151_vm0, %v4183_v24 }
 0x2da   :  { %3445 = vmatprep.subr.bf16.mxu1 %v3444_v57 }
 0x2dc   :  { %3276 = vmatmul.mubr.msk.f32.vlgmr.msra.gmra.mrb[6].mxu1 %vm151_vm0, %v4189_v27 }
 0x2dd   :  { %3447 = vmatpush1.bf16.msra.mxu1 %v3446_v62  ;;  %830 = vmatprep.mubr.f32.mxu1 %v3953_v18  ;;  %v737_v62 = vrot.slane %v4298_v59, %v736_v56 }
 0x2de   :  { %3449 = vmatprep.subr.bf16.mxu1 %v3448_v9 }
 0x2e1   :  { %3451 = vmatpush1.bf16.msra.mxu1 %v3450_v16 }
 0x2e2   :  { %3461 = vmatprep.subr.bf16.mxu1 %v3460_v21 }
 0x3ab   :  { %v3270_v1 = vpop.f32.mrb[4].mxu1 }
 0x3ac   :  { %v515_v3 = vpop.f32.mrb[5].mxu1 }
 0x3ad   :  { %3286 = vmatprep.mubr.msk.f32.mxu0 %vm610_vm2, %v515_v3 }
 0x3ae   :  { %3287 = vmatmul.mubr.msk.f32.vlgmr.msra.gmra.mrb[4].mxu0 %vm610_vm2, %v3270_v1 }
 0x3af   :  { %v3277_v4 = vpop.f32.mrb[6].mxu1  ;;  %3455 = vmatpush1.bf16.msra.mxu0 %v3454_v2 }
 0x3b0   :  { %v590_v5 = vpop.f32.mrb[7].mxu1  ;;  %3457 = vmatprep.subr.bf16.mxu0 %v3456_v12 }
 0x3b1   :  { %3289 = vmatprep.mubr.msk.f32.mxu0 %vm610_vm2, %v590_v5 }
 0x3b2   :  { %3290 = vmatmul.mubr.msk.f32.gmra.mrb[6].mxu0 %vm610_vm2, %v3277_v4 }
 0x3b3   :  { %3459 = vmatpush1.bf16.msra.mxu0 %v3458_v17  ;;  %919 = vmatprep.mubr.f32.mxu0 %v3953_v18 }
 0x481   :  { %v3288_v25 = vpop.f32.mrb[4].mxu0 }
 0x482   :  { %v689_v28 = vpop.f32.mrb[5].mxu0  ;;  %v695_v32 = vadd.f32 %v3288_v25, %v3023_v23 }
 0x483   :  { %v690_v29 = vadd.f32 %v3023_v23, %v689_v28 }
 0x484   :  { %v4247_v37 = vmax.f32 %v695_v32, 0.0 }
 0x485   :  { %v4239_v33 = vmax.f32 %v690_v29, 0.0  ;;  %v3291_v34 = vpop.f32.mrb[6].mxu0 }
 0x486   :  { %v699_v35 = vpop.f32.mrb[7].mxu0  ;;  %v705_v39 = vadd.f32 %v3291_v34, %v3023_v23 }
 0x487   :  { %3028 = vmatmul.mubr.msk.f32.vlgmr.msra.gmra.mrb[8].mxu1 %vm610_vm2, %v4239_v33  ;;  %3032 = vmatmul.mubr.msk.f32.vlgmr.msra.gmra.mrb[8].mxu0 %vm610_vm2, %v4239_v33  ;;  %v700_v38 = vadd.f32 %v3023_v23, %v699_v35 }
 0x488   :  { %836 = vmatprep.mubr.f32.mxu1 %v3953_v18  ;;  %925 = vmatprep.mubr.f32.mxu0 %v3953_v18  ;;  %v4263_v41 = vmax.f32 %v705_v39, 0.0 }
 0x489   :  { %3463 = vmatpush3.bf16.msra.mxu1 %v3460_v21  ;;  %v4255_v40 = vmax.f32 %v700_v38, 0.0 }
 0x48a   :  { %3465 = vmatprep.subr.bf16.mxu1 %v3464_v36 }
 0x48b   :  { %3029 = vmatmul.mubr.msk.f32.gmra.mrb[10].mxu1 %vm610_vm2, %v4247_v37  ;;  %3033 = vmatmul.mubr.msk.f32.gmra.mrb[10].mxu0 %vm610_vm2, %v4247_v37 }
 0x48c   :  { %842 = vmatprep.mubr.f32.mxu1 %v3953_v18  ;;  %931 = vmatprep.mubr.f32.mxu0 %v3953_v18 }
 0x48d   :  { %3467 = vmatpush3.bf16.msra.mxu1 %v3464_v36 }
 0x48f   :  { %3030 = vmatmul.mubr.msk.f32.gmra.mrb[12].mxu1 %vm610_vm2, %v4255_v40  ;;  %3034 = vmatmul.mubr.msk.f32.gmra.mrb[12].mxu0 %vm610_vm2, %v4255_v40 }
 0x490   :  { %848 = vmatprep.mubr.f32.mxu1 %v3953_v18  ;;  %937 = vmatprep.mubr.f32.mxu0 %v3953_v18 }
 0x493   :  { %3031 = vmatmul.mubr.msk.f32.gmra.mrb[14].mxu1 %vm610_vm2, %v4263_v41  ;;  %3035 = vmatmul.mubr.msk.f32.gmra.mrb[14].mxu0 %vm610_vm2, %v4263_v41 }
 0x494   :  { %3300 = vmatprep.mubr.msk.f32.mxu1 %vm610_vm2, %v4239_v33 }
 0x497   :  { %3301 = vmatmul.mubr.msk.f32.vlgmr.msra.gmra.mrb[16].mxu1 %vm610_vm2, %v4247_v37 }
 0x498   :  { %3303 = vmatprep.mubr.msk.f32.mxu1 %vm610_vm2, %v4255_v40 }
 0x49b   :  { %3304 = vmatmul.mubr.msk.f32.gmra.mrb[18].mxu1 %vm610_vm2, %v4263_v41 }
 0x55a   :  { %v832_v43 = vpop.f32.mrb[8].mxu1  ;;  %v4277_v46 = vpop.f32.mrb[8].mxu0 }
 0x55b   :  { %v4279_v47 = vpop.f32.mrb[9].mxu1  ;;  %v4281_v48 = vpop.f32.mrb[9].mxu0  ;;  %v833_v4 = vadd.f32 %v832_v43, %v737_v62 }
 0x55e   :  { %v838_v50 = vpop.f32.mrb[10].mxu1  ;;  %v4286_v53 = vpop.f32.mrb[10].mxu0 }
 0x55f   :  { %v4288_v54 = vpop.f32.mrb[11].mxu1  ;;  %v4290_v55 = vpop.f32.mrb[11].mxu0  ;;  %v839_v3 = vadd.f32 %v838_v50, %v737_v62 }
 0x562   :  { %v844_v57 = vpop.f32.mrb[12].mxu1  ;;  %v4293_v58 = vpop.f32.mrb[12].mxu0 }
 0x563   :  { %v4300_v60 = vpop.f32.mrb[13].mxu1  ;;  %v4302_v61 = vpop.f32.mrb[13].mxu0  ;;  %v845_v11 = vadd.f32 %v844_v57, %v737_v62 }
 0x566   :  { %v850_v63 = vpop.f32.mrb[14].mxu1  ;;  %v4305_v0 = vpop.f32.mrb[14].mxu0 }
 0x567   :  { %v4307_v1 = vpop.f32.mrb[15].mxu1  ;;  %v4309_v2 = vpop.f32.mrb[15].mxu0  ;;  %v851_v9 = vadd.f32 %v850_v63, %v737_v62 }
 0x56a   :  { %v3302_v5 = vpop.f32.mrb[16].mxu1 }
 0x56b   :  { %v1020_v6 = vadd.f32 %v3302_v5, %v839_v3  ;;  %v1014_v7 = vpop.f32.mrb[17].mxu1 }
 0x56c   :  { %v1015_v8 = vadd.f32 %v1014_v7, %v833_v4 }
 0x56d   :  { %v3041_v10 = vmul.f32 -1.442695, %v1020_v6 }
 0x56e   :  { %v3040_v12 = vmul.f32 -1.442695, %v1015_v8  ;;  %v3305_v13 = vpop.f32.mrb[18].mxu1 }
 0x56f   :  { %3566 = vpow2.f32 %v3041_v10  ;;  %v1030_v14 = vadd.f32 %v3305_v13, %v851_v9  ;;  %v1024_v15 = vpop.f32.mrb[19].mxu1 }
 0x570   :  { %3568 = vpow2.f32 %v3040_v12  ;;  %v1025_v16 = vadd.f32 %v1024_v15, %v845_v11 }
 0x571   :  { %v3043_v17 = vmul.f32 -1.442695, %v1030_v14 }
 0x572   :  { %v3042_v19 = vmul.f32 -1.442695, %v1025_v16 }
 0x573   :  { %3570 = vpow2.f32 %v3043_v17 }
 0x574   :  { %3572 = vpow2.f32 %v3042_v19 }
 0x579   :  { %v3567_v20 = vpop.eup %3566 }
 0x57a   :  { %v3569_v21 = vpop.eup %3568  ;;  %v1046_v23 = vadd.f32 1.0, %v3567_v20 }
 0x57b   :  { %v1045_v25 = vadd.f32 1.0, %v3569_v21 }
 0x57c   :  { %3574 = vrcp.f32 %v1046_v23 }
 0x57d   :  { %v3571_v28 = vpop.eup %3570  ;;  %3576 = vrcp.f32 %v1045_v25 }
 0x57e   :  { %v3573_v29 = vpop.eup %3572  ;;  %v1048_v30 = vadd.f32 1.0, %v3571_v28 }
 0x57f   :  { %v1047_v31 = vadd.f32 1.0, %v3573_v29 }
 0x580   :  { %3578 = vrcp.f32 %v1048_v30 }
 0x581   :  { %3580 = vrcp.f32 %v1047_v31 }
 0x586   :  { %v3575_v32 = vpop.eup %3574 }
 0x587   :  { %v3577_v34 = vpop.eup %3576  ;;  %v1058_v35 = vmul.f32 2.0, %v3575_v32 }
 0x588   :  { %v1057_v36 = vmul.f32 2.0, %v3577_v34 }
 0x589   :  { %v3045_v38 = vadd.f32 -1.0, %v1058_v35 }
 0x58a   :  { %v4311_v39 = vpop.eup %3578  ;;  %v3044_v43 = vadd.f32 -1.0, %v1057_v36  ;;  %v3052_v36 = vld [vmem:[%s4781_s11 + $0x20] sm:$0xff] }
 0x58b   :  { %v3581_v50 = vpop.eup %3580  ;;  %1071 = vrot.lane.b32.xlu1 %v3045_v38, %s3954_s24  ;;  %v1060_v62 = vmul.f32 2.0, %v4311_v39  ;;  %v3053_v38 = vld [vmem:[%s4781_s11 + $0x28] sm:$0xff] }
 0x58c   :  { %1069 = vrot.lane.b32.xlu0 %v3044_v43, %s3954_s24  ;;  %v1059_v56 = vmul.f32 2.0, %v3581_v50  ;;  %v3468_v43 = vpack.c.bf16 %v3053_v38, %v3052_v36 }
 0x58d   :  { %v3047_v63 = vadd.f32 -1.0, %v1060_v62 }
 0x58e   :  { %v3046_v57 = vadd.f32 -1.0, %v1059_v56  ;;  %3469 = vmatprep.subr.bf16.mxu0 %v3468_v43 }
 0x58f   :  { %3471 = vmatpush3.bf16.msra.mxu0 %v3468_v43 }
 0x590   :  { %1073 = vrot.lane.b32.xlu1 %v3046_v57, %s3954_s24 }
 0x594   :  { %1075 = vrot.lane.b32.xlu1 %v3047_v63, %s3954_s24 }
 0x5fd   :  { %v1072_v3 = vpop.permute.xlu1 %1071 }
 0x5fe   :  { %v1070_v4 = vpop.permute.xlu0 %1069  ;;  %v1082_v5 = vmul.f32 %v3575_v32, %v1072_v3 }
 0x5ff   :  { %v1081_v6 = vmul.f32 %v3577_v34, %v1070_v4 }
 0x600   :  { %1091 = vrot.lane.b32.xlu1 %v1082_v5, %s3951_s5 }
 0x601   :  { %1089 = vrot.lane.b32.xlu0 %v1081_v6, %s3951_s5 }
 0x602   :  { %v1074_v7 = vpop.permute.xlu1 %1073 }
 0x603   :  { %v1083_v8 = vmul.f32 %v3581_v50, %v1074_v7 }
 0x605   :  { %1093 = vrot.lane.b32.xlu0 %v1083_v8, %s3951_s5 }
 0x606   :  { %v1076_v9 = vpop.permute.xlu1 %1075 }
 0x607   :  { %v1084_v10 = vmul.f32 %v4311_v39, %v1076_v9 }
 0x609   :  { %1095 = vrot.lane.b32.xlu1 %v1084_v10, %s3951_s5 }
 0x672   :  { %v1092_v11 = vpop.permute.xlu1 %1091 }
 0x673   :  { %v1102_v12 = vadd.f32 %v3575_v32, %v1092_v11  ;;  %v1090_v13 = vpop.permute.xlu0 %1089 }
 0x674   :  { %v1101_v14 = vadd.f32 %v3577_v34, %v1090_v13  ;;  %v3054_v13 = vld [vmem:[%s4781_s11 + $0x30] sm:$0xff] }
 0x675   :  { %3582 = vtanh.f32 %v1102_v12 }
 0x676   :  { %3584 = vtanh.f32 %v1101_v14  ;;  %v1129_v63 = vadd.f32 2.0, %v1101_v14  ;;  %v3055_v14 = vld [vmem:[%s4781_s11 + $0x38] sm:$0xff] }
 0x677   :  { %v1094_v15 = vpop.permute.xlu0 %1093 }
 0x678   :  { %v1103_v16 = vadd.f32 %v3581_v50, %v1094_v15  ;;  %v3048_v3 = vmul.f32 -1.442695, %v1129_v63 }
 0x67a   :  { %3586 = vtanh.f32 %v1103_v16  ;;  %v1131_v4 = vadd.f32 2.0, %v1103_v16  ;;  %v3472_v16 = vpack.c.bf16 %v3055_v14, %v3054_v13  ;;  %v740_v13 = vsub.s32 1, %v4284_v49 }
 0x67b   :  { %v1096_v17 = vpop.permute.xlu1 %1095 }
 0x67c   :  { %v1104_v19 = vadd.f32 %v4311_v39, %v1096_v17  ;;  %v3050_v5 = vmul.f32 -1.442695, %v1131_v4  ;;  %3473 = vmatprep.subr.bf16.mxu0 %v3472_v16  ;;  %v741_v14 = vrot.slane %v4298_v59, %v740_v13 }
 0x67d   :  { %3475 = vmatpush3.bf16.msra.mxu0 %v3472_v16 }
 0x67e   :  { %3588 = vtanh.f32 %v1104_v19  ;;  %v1132_v6 = vadd.f32 2.0, %v1104_v19  ;;  %v835_v16 = vadd.f32 %v4279_v47, %v741_v14 }
 0x67f   :  { %v3583_v20 = vpop.eup %3582 }
 0x680   :  { %v3585_v21 = vpop.eup %3584  ;;  %1115 = vrot.lane.b32.xlu1 %v3583_v20, %s3954_s24 }
 0x681   :  { %1113 = vrot.lane.b32.xlu0 %v3585_v21, %s3954_s24 }
 0x684   :  { %v3587_v23 = vpop.eup %3586 }
 0x685   :  { %1117 = vrot.lane.b32.xlu0 %v3587_v23, %s3954_s24 }
 0x688   :  { %v3589_v25 = vpop.eup %3588 }
 0x689   :  { %1157 = vrot.lane.b32.xlu0 %v4239_v33, %s3951_s5  ;;  %1119 = vrot.lane.b32.xlu1 %v3589_v25, %s3954_s24 }
 0x68d   :  { %1159 = vrot.lane.b32.xlu0 %v4247_v37, %s3951_s5 }
 0x691   :  { %1161 = vrot.lane.b32.xlu0 %v4255_v40, %s3951_s5 }
 0x695   :  { %1163 = vrot.lane.b32.xlu0 %v4263_v41, %s3951_s5 }
 0x6f2   :  { %v1116_v28 = vpop.permute.xlu1 %1115 }
 0x6f3   :  { %v1126_v29 = vmul.f32 %v3575_v32, %v1116_v28  ;;  %v1114_v30 = vpop.permute.xlu0 %1113 }
 0x6f4   :  { %v1125_v31 = vmul.f32 %v3577_v34, %v1114_v30  ;;  %v1130_v34 = vadd.f32 2.0, %v1102_v12 }
 0x6f5   :  { %1183 = vrot.lane.b32.xlu1 %v1126_v29, %s3954_s24 }
 0x6f6   :  { %v3049_v62 = vmul.f32 -1.442695, %v1130_v34 }
 0x6f7   :  { %v1118_v35 = vpop.permute.xlu0 %1117 }
 0x6f8   :  { %v1127_v56 = vmul.f32 %v3581_v50, %v1118_v35  ;;  %3590 = vpow2.f32 %v3049_v62  ;;  %v3051_v50 = vmul.f32 -1.442695, %v1132_v6 }
 0x6f9   :  { %1181 = vrot.lane.b32.xlu1 %v1125_v31, %s3954_s24  ;;  %3592 = vpow2.f32 %v3048_v3 }
 0x6fa   :  { %3594 = vpow2.f32 %v3050_v5 }
 0x6fb   :  { %v1120_v57 = vpop.permute.xlu1 %1119  ;;  %3596 = vpow2.f32 %v3051_v50  ;;  %v1158_v15 = vpop.permute.xlu0 %1157 }
 0x6fc   :  { %v1128_v32 = vmul.f32 %v4311_v39, %v1120_v57 }
 0x6fd   :  { %1185 = vrot.lane.b32.xlu1 %v1127_v56, %s3954_s24 }
 0x6ff   :  { %v1160_v20 = vpop.permute.xlu0 %1159 }
 0x701   :  { %1187 = vrot.lane.b32.xlu1 %v1128_v32, %s3954_s24 }
 0x702   :  { %v3591_v7 = vpop.eup %3590 }
 0x703   :  { %v1146_v8 = vadd.f32 1.0, %v3591_v7  ;;  %v3593_v9 = vpop.eup %3592  ;;  %v1162_v36 = vpop.permute.xlu0 %1161 }
 0x704   :  { %v1145_v10 = vadd.f32 1.0, %v3593_v9  ;;  %v3595_v39 = vpop.eup %3594 }
 0x705   :  { %3598 = vrcp.f32 %v1146_v8  ;;  %v1147_v11 = vadd.f32 1.0, %v3595_v39  ;;  %v3597_v12 = vpop.eup %3596 }
 0x706   :  { %3600 = vrcp.f32 %v1145_v10  ;;  %v1148_v17 = vadd.f32 1.0, %v3597_v12 }
 0x707   :  { %3602 = vrcp.f32 %v1147_v11  ;;  %v1164_v4 = vpop.permute.xlu0 %1163 }
 0x708   :  { %3604 = vrcp.f32 %v1148_v17 }
 0x70f   :  { %v4353_v19 = vpop.eup %3598 }
 0x710   :  { %v1174_v21 = vsub.f32 1.0, %v4353_v19  ;;  %v4356_v23 = vpop.eup %3600  ;;  %v1170_v28 = vmul.f32 %v4353_v19, %v1160_v20 }
 0x711   :  { %v1173_v31 = vsub.f32 1.0, %v4356_v23  ;;  %v4362_v35 = vpop.eup %3602  ;;  %v1169_v43 = vmul.f32 %v4356_v23, %v1158_v15  ;;  %v841_v15 = vadd.f32 %v4288_v54, %v741_v14 }
 0x712   :  { %v1175_v32 = vsub.f32 1.0, %v4362_v35  ;;  %v4370_v34 = vpop.eup %3604  ;;  %v1171_v63 = vmul.f32 %v4362_v35, %v1162_v36  ;;  %v847_v36 = vadd.f32 %v4300_v60, %v741_v14 }
 0x713   :  { %v1176_v6 = vsub.f32 1.0, %v4370_v34  ;;  %v1172_v7 = vmul.f32 %v4370_v34, %v1164_v4 }
 0x767   :  { %v1184_v25 = vpop.permute.xlu1 %1183 }
 0x768   :  { %v1194_v29 = vmul.f32 %v1184_v25, %v1174_v21 }
 0x76a   :  { %v4359_v30 = vadd.f32 %v1194_v29, %v1170_v28 }
 0x76b   :  { %v1182_v38 = vpop.permute.xlu1 %1181 }
 0x76c   :  { %v1193_v56 = vmul.f32 %v1182_v38, %v1173_v31  ;;  %1216 = vrot.lane.b32.xlu1 %v4359_v30, %s3955_s29  ;;  %v853_v31 = vadd.f32 %v4307_v1, %v741_v14 }
 0x76e   :  { %v4367_v57 = vadd.f32 %v1193_v56, %v1169_v43 }
 0x76f   :  { %v1186_v62 = vpop.permute.xlu1 %1185 }
 0x770   :  { %v1195_v3 = vmul.f32 %v1186_v62, %v1175_v32  ;;  %1214 = vrot.lane.b32.xlu0 %v4367_v57, %s3955_s29 }
 0x772   :  { %v4375_v5 = vadd.f32 %v1195_v3, %v1171_v63 }
 0x773   :  { %v1188_v50 = vpop.permute.xlu1 %1187 }
 0x774   :  { %v1196_v8 = vmul.f32 %v1188_v50, %v1176_v6  ;;  %1218 = vrot.lane.b32.xlu0 %v4375_v5, %s3955_s29 }
 0x776   :  { %v4381_v9 = vadd.f32 %v1196_v8, %v1172_v7 }
 0x778   :  { %1220 = vrot.lane.b32.xlu1 %v4381_v9, %s3955_s29 }
 0x7de   :  { %v1217_v39 = vpop.permute.xlu1 %1216 }
 0x7e2   :  { %v1215_v10 = vpop.permute.xlu0 %1214 }
 0x7e3   :  { %3314 = vmatprep.mubr.msk.f32.mxu0 %vm610_vm2, %v1215_v10 }
 0x7e4   :  { %3315 = vmatmul.mubr.msk.f32.vlgmr.msra.gmra.mrb[16].mxu0 %vm610_vm2, %v1217_v39 }
 0x7e6   :  { %v1219_v11 = vpop.permute.xlu0 %1218 }
 0x7e7   :  { %3317 = vmatprep.mubr.msk.f32.mxu0 %vm610_vm2, %v1219_v11 }
 0x7ea   :  { %v1221_v12 = vpop.permute.xlu1 %1220 }
 0x7eb   :  { %3318 = vmatmul.mubr.msk.f32.gmra.mrb[18].mxu0 %vm610_vm2, %v1221_v12 }
 0x8b7   :  { %v3316_v17 = vpop.f32.mrb[16].mxu0 }
 0x8b8   :  { %v1302_v20 = vadd.f32 %v3316_v17, %v841_v15  ;;  %v1296_v21 = vpop.f32.mrb[17].mxu0 }
 0x8b9   :  { %v1297_v25 = vadd.f32 %v1296_v21, %v835_v16 }
 0x8ba   :  { %v3061_v28 = vmul.f32 -1.442695, %v1302_v20 }
 0x8bb   :  { %v3060_v29 = vmul.f32 -1.442695, %v1297_v25 }
 0x8bc   :  { %3606 = vpow2.f32 %v3061_v28 }
 0x8bd   :  { %3608 = vpow2.f32 %v3060_v29 }
 0x8be   :  { %v3319_v38 = vpop.f32.mrb[18].mxu0 }
 0x8bf   :  { %v1312_v43 = vadd.f32 %v3319_v38, %v853_v31  ;;  %v1306_v56 = vpop.f32.mrb[19].mxu0 }
 0x8c0   :  { %v1307_v32 = vadd.f32 %v1306_v56, %v847_v36 }
 0x8c1   :  { %v3063_v62 = vmul.f32 -1.442695, %v1312_v43 }
 0x8c2   :  { %v3062_v54 = vmul.f32 -1.442695, %v1307_v32 }
 0x8c3   :  { %3610 = vpow2.f32 %v3063_v62 }
 0x8c4   :  { %3612 = vpow2.f32 %v3062_v54 }
 0x8c6   :  { %v3607_v47 = vpop.eup %3606 }
 0x8c7   :  { %v3609_v63 = vpop.eup %3608  ;;  %v1328_v3 = vadd.f32 1.0, %v3607_v47 }
 0x8c8   :  { %v1327_v4 = vadd.f32 1.0, %v3609_v63 }
 0x8c9   :  { %3614 = vrcp.f32 %v1328_v3 }
 0x8ca   :  { %3616 = vrcp.f32 %v1327_v4 }
 0x8cd   :  { %v3611_v6 = vpop.eup %3610 }
 0x8ce   :  { %v3613_v50 = vpop.eup %3612  ;;  %v1330_v1 = vadd.f32 1.0, %v3611_v6 }
 0x8cf   :  { %v1329_v7 = vadd.f32 1.0, %v3613_v50 }
 0x8d0   :  { %3618 = vrcp.f32 %v1330_v1 }
 0x8d1   :  { %3620 = vrcp.f32 %v1329_v7 }
 0x8d3   :  { %v3615_v60 = vpop.eup %3614 }
 0x8d4   :  { %v3617_v8 = vpop.eup %3616  ;;  %v1340_v10 = vmul.f32 2.0, %v3615_v60 }
 0x8d5   :  { %v1339_v39 = vmul.f32 2.0, %v3617_v8 }
 0x8d6   :  { %v3065_v11 = vadd.f32 -1.0, %v1340_v10 }
 0x8d7   :  { %v3064_v12 = vadd.f32 -1.0, %v1339_v39 }
 0x8d8   :  { %1353 = vrot.lane.b32.xlu1 %v3065_v11, %s3954_s24 }
 0x8d9   :  { %1351 = vrot.lane.b32.xlu0 %v3064_v12, %s3954_s24 }
 0x8da   :  { %v3619_v13 = vpop.eup %3618 }
 0x8db   :  { %v3621_v14 = vpop.eup %3620  ;;  %v1342_v15 = vmul.f32 2.0, %v3619_v13 }
 0x8dc   :  { %v1341_v16 = vmul.f32 2.0, %v3621_v14 }
 0x8dd   :  { %v3067_v17 = vadd.f32 -1.0, %v1342_v15  ;;  %v3072_v15 = vld [vmem:[%s4781_s11 + $0x40] sm:$0xff] }
 0x8de   :  { %v3066_v20 = vadd.f32 -1.0, %v1341_v16  ;;  %v3073_v16 = vld [vmem:[%s4781_s11 + $0x48] sm:$0xff] }
 0x8df   :  { %1357 = vrot.lane.b32.xlu1 %v3067_v17, %s3954_s24  ;;  %v3074_v17 = vld [vmem:[%s4781_s11 + $0x50] sm:$0xff] }
 0x8e0   :  { %1355 = vrot.lane.b32.xlu0 %v3066_v20, %s3954_s24  ;;  %v3476_v20 = vpack.c.bf16 %v3073_v16, %v3072_v15 }
 0x8e2   :  { %3477 = vmatprep.subr.bf16.mxu1 %v3476_v20 }
 0x8e3   :  { %3479 = vmatpush3.bf16.msra.mxu1 %v3476_v20 }
 0x94a   :  { %v1354_v21 = vpop.permute.xlu1 %1353 }
 0x94b   :  { %v1364_v25 = vmul.f32 %v3615_v60, %v1354_v21  ;;  %v1352_v28 = vpop.permute.xlu0 %1351 }
 0x94c   :  { %v1363_v29 = vmul.f32 %v3617_v8, %v1352_v28 }
 0x94d   :  { %1373 = vrot.lane.b32.xlu1 %v1364_v25, %s3951_s5 }
 0x94e   :  { %1371 = vrot.lane.b32.xlu0 %v1363_v29, %s3951_s5 }
 0x951   :  { %v1358_v31 = vpop.permute.xlu1 %1357 }
 0x952   :  { %v1366_v36 = vmul.f32 %v3619_v13, %v1358_v31  ;;  %v1356_v38 = vpop.permute.xlu0 %1355 }
 0x953   :  { %v1365_v43 = vmul.f32 %v3621_v14, %v1356_v38 }
 0x954   :  { %1377 = vrot.lane.b32.xlu1 %v1366_v36, %s3951_s5 }
 0x955   :  { %1375 = vrot.lane.b32.xlu0 %v1365_v43, %s3951_s5 }
 0x9bf   :  { %v1374_v56 = vpop.permute.xlu1 %1373 }
 0x9c0   :  { %v1384_v32 = vadd.f32 %v3615_v60, %v1374_v56  ;;  %v1372_v62 = vpop.permute.xlu0 %1371 }
 0x9c1   :  { %v1383_v54 = vadd.f32 %v3617_v8, %v1372_v62 }
 0x9c2   :  { %3622 = vtanh.f32 %v1384_v32  ;;  %v1412_v31 = vadd.f32 2.0, %v1384_v32 }
 0x9c3   :  { %3624 = vtanh.f32 %v1383_v54  ;;  %v1411_v36 = vadd.f32 2.0, %v1383_v54 }
 0x9c4   :  { %v3069_v38 = vmul.f32 -1.442695, %v1412_v31 }
 0x9c5   :  { %v3068_v43 = vmul.f32 -1.442695, %v1411_v36 }
 0x9c6   :  { %v1378_v47 = vpop.permute.xlu1 %1377 }
 0x9c7   :  { %v1386_v63 = vadd.f32 %v3619_v13, %v1378_v47  ;;  %v1376_v3 = vpop.permute.xlu0 %1375 }
 0x9c8   :  { %v1385_v4 = vadd.f32 %v3621_v14, %v1376_v3 }
 0x9c9   :  { %3626 = vtanh.f32 %v1386_v63  ;;  %v1414_v56 = vadd.f32 2.0, %v1386_v63 }
 0x9ca   :  { %3628 = vtanh.f32 %v1385_v4  ;;  %v1413_v62 = vadd.f32 2.0, %v1385_v4 }
 0x9cb   :  { %3630 = vpow2.f32 %v3069_v38  ;;  %v3071_v47 = vmul.f32 -1.442695, %v1414_v56 }
 0x9cc   :  { %v3623_v6 = vpop.eup %3622  ;;  %3632 = vpow2.f32 %v3068_v43  ;;  %v3070_v3 = vmul.f32 -1.442695, %v1413_v62 }
 0x9cd   :  { %v3625_v50 = vpop.eup %3624  ;;  %1397 = vrot.lane.b32.xlu1 %v3623_v6, %s3954_s24  ;;  %3634 = vpow2.f32 %v3071_v47 }
 0x9ce   :  { %1395 = vrot.lane.b32.xlu0 %v3625_v50, %s3954_s24  ;;  %3636 = vpow2.f32 %v3070_v3 }
 0x9d3   :  { %v3627_v1 = vpop.eup %3626 }
 0x9d4   :  { %v3629_v7 = vpop.eup %3628  ;;  %1401 = vrot.lane.b32.xlu1 %v3627_v1, %s3954_s24 }
 0x9d5   :  { %1399 = vrot.lane.b32.xlu0 %v3629_v7, %s3954_s24 }
 0xa3f   :  { %v1398_v10 = vpop.permute.xlu1 %1397 }
 0xa40   :  { %v1408_v39 = vmul.f32 %v3615_v60, %v1398_v10  ;;  %v1396_v11 = vpop.permute.xlu0 %1395  ;;  %v3075_v60 = vld [vmem:[%s4781_s11 + $0x58] sm:$0xff] }
 0xa41   :  { %v1407_v12 = vmul.f32 %v3617_v8, %v1396_v11  ;;  %v3480_v8 = vpack.c.bf16 %v3075_v60, %v3074_v17 }
 0xa42   :  { %1453 = vrot.lane.b32.xlu1 %v1408_v39, %s3954_s24 }
 0xa43   :  { %1451 = vrot.lane.b32.xlu0 %v1407_v12, %s3954_s24  ;;  %3481 = vmatprep.subr.bf16.mxu1 %v3480_v8 }
 0xa44   :  { %3483 = vmatpush3.bf16.msra.mxu1 %v3480_v8 }
 0xa46   :  { %v1402_v21 = vpop.permute.xlu1 %1401 }
 0xa47   :  { %v1410_v25 = vmul.f32 %v3619_v13, %v1402_v21  ;;  %v1400_v28 = vpop.permute.xlu0 %1399  ;;  %v3631_v13 = vpop.eup %3630 }
 0xa48   :  { %v1409_v29 = vmul.f32 %v3621_v14, %v1400_v28  ;;  %v3633_v6 = vpop.eup %3632  ;;  %v1428_v14 = vadd.f32 1.0, %v3631_v13 }
 0xa49   :  { %1457 = vrot.lane.b32.xlu1 %v1410_v25, %s3954_s24  ;;  %v1427_v50 = vadd.f32 1.0, %v3633_v6  ;;  %v3635_v1 = vpop.eup %3634 }
 0xa4a   :  { %1455 = vrot.lane.b32.xlu0 %v1409_v29, %s3954_s24  ;;  %3638 = vrcp.f32 %v1428_v14  ;;  %v3637_v7 = vpop.eup %3636  ;;  %v1430_v32 = vadd.f32 1.0, %v3635_v1 }
 0xa4b   :  { %3640 = vrcp.f32 %v1427_v50  ;;  %v1429_v54 = vadd.f32 1.0, %v3637_v7 }
 0xa4c   :  { %3642 = vrcp.f32 %v1430_v32 }
 0xa4d   :  { %3644 = vrcp.f32 %v1429_v54 }
 0xa54   :  { %v4423_v63 = vpop.eup %3638 }
 0xa55   :  { %v4425_v4 = vpop.eup %3640  ;;  %v1444_v10 = vsub.f32 1.0, %v4423_v63  ;;  %v1440_v12 = vmul.f32 %v4423_v63, %v4359_v30 }
 0xa56   :  { %v1443_v11 = vsub.f32 1.0, %v4425_v4  ;;  %v1439_v17 = vmul.f32 %v4425_v4, %v4367_v57  ;;  %v4433_v60 = vpop.eup %3642 }
 0xa57   :  { %v4437_v21 = vpop.eup %3644  ;;  %v1446_v30 = vsub.f32 1.0, %v4433_v60  ;;  %v1442_v29 = vmul.f32 %v4433_v60, %v4381_v9 }
 0xa58   :  { %v1445_v57 = vsub.f32 1.0, %v4437_v21  ;;  %v1441_v38 = vmul.f32 %v4437_v21, %v4375_v5  ;;  %v744_v5 = vsub.s32 2, %v4284_v49 }
 0xa5a   :  { %v745_v6 = vrot.slane %v4298_v59, %v744_v5 }
 0xa5c   :  { %v928_v14 = vadd.f32 %v4286_v53, %v745_v6  ;;  %v922_v50 = vadd.f32 %v4277_v46, %v745_v6 }
 0xab4   :  { %v1454_v39 = vpop.permute.xlu1 %1453 }
 0xab5   :  { %v1464_v15 = vmul.f32 %v1454_v39, %v1444_v10  ;;  %v1452_v16 = vpop.permute.xlu0 %1451 }
 0xab6   :  { %v1463_v20 = vmul.f32 %v1452_v16, %v1443_v11  ;;  %v940_v11 = vadd.f32 %v4305_v0, %v745_v6 }
 0xab7   :  { %v4435_v8 = vadd.f32 %v1464_v15, %v1440_v12  ;;  %v934_v12 = vadd.f32 %v4293_v58, %v745_v6 }
 0xab8   :  { %v4439_v25 = vadd.f32 %v1463_v20, %v1439_v17 }
 0xab9   :  { %1490 = vrot.lane.b32.xlu1 %v4435_v8, %s3955_s29 }
 0xaba   :  { %1488 = vrot.lane.b32.xlu0 %v4439_v25, %s3955_s29 }
 0xabb   :  { %v1458_v28 = vpop.permute.xlu1 %1457 }
 0xabc   :  { %v1466_v31 = vmul.f32 %v1458_v28, %v1446_v30  ;;  %v1456_v36 = vpop.permute.xlu0 %1455 }
 0xabd   :  { %v1465_v43 = vmul.f32 %v1456_v36, %v1445_v57 }
 0xabe   :  { %v4451_v56 = vadd.f32 %v1466_v31, %v1442_v29 }
 0xabf   :  { %v4453_v62 = vadd.f32 %v1465_v43, %v1441_v38 }
 0xac0   :  { %1494 = vrot.lane.b32.xlu1 %v4451_v56, %s3955_s29 }
 0xac1   :  { %1492 = vrot.lane.b32.xlu0 %v4453_v62, %s3955_s29 }
 0xb2b   :  { %v1491_v3 = vpop.permute.xlu1 %1490 }
 0xb2c   :  { %v1489_v47 = vpop.permute.xlu0 %1488 }
 0xb2d   :  { %3328 = vmatprep.mubr.msk.f32.mxu1 %vm610_vm2, %v1489_v47 }
 0xb2e   :  { %3329 = vmatmul.mubr.msk.f32.vlgmr.msra.gmra.mrb[20].mxu1 %vm610_vm2, %v1491_v3 }
 0xb32   :  { %v1495_v13 = vpop.permute.xlu1 %1494 }
 0xb33   :  { %v1493_v9 = vpop.permute.xlu0 %1492 }
 0xb34   :  { %3331 = vmatprep.mubr.msk.f32.mxu1 %vm610_vm2, %v1493_v9 }
 0xb35   :  { %3332 = vmatmul.mubr.msk.f32.gmra.mrb[22].mxu1 %vm610_vm2, %v1495_v13 }
 0xb36   :  { %3352 = vmatprep.mubr.msk.f32.mxu1 %vm151_vm0, %v4179_v22 }
 0xc01   :  { %v3330_v1 = vpop.f32.mrb[20].mxu1 }
 0xc02   :  { %v1576_v7 = vadd.f32 %v3330_v1, %v928_v14  ;;  %v1570_v32 = vpop.f32.mrb[21].mxu1 }
 0xc03   :  { %v1571_v54 = vadd.f32 %v1570_v32, %v922_v50 }
 0xc04   :  { %v3081_v10 = vmul.f32 -1.442695, %v1576_v7 }
 0xc05   :  { %v3080_v39 = vmul.f32 -1.442695, %v1571_v54 }
 0xc06   :  { %3646 = vpow2.f32 %v3081_v10 }
 0xc07   :  { %3648 = vpow2.f32 %v3080_v39 }
 0xc08   :  { %v3333_v15 = vpop.f32.mrb[22].mxu1 }
 0xc09   :  { %v1586_v16 = vadd.f32 %v3333_v15, %v940_v11  ;;  %v1580_v17 = vpop.f32.mrb[23].mxu1 }
 0xc0a   :  { %v1581_v59 = vadd.f32 %v1580_v17, %v934_v12 }
 0xc0b   :  { %v3083_v20 = vmul.f32 -1.442695, %v1586_v16 }
 0xc0c   :  { %v3082_v53 = vmul.f32 -1.442695, %v1581_v59 }
 0xc0d   :  { %3650 = vpow2.f32 %v3083_v20 }
 0xc0e   :  { %3652 = vpow2.f32 %v3082_v53 }
 0xc10   :  { %v3647_v46 = vpop.eup %3646 }
 0xc11   :  { %v3649_v30 = vpop.eup %3648  ;;  %v1602_v28 = vadd.f32 1.0, %v3647_v46 }
 0xc12   :  { %v1601_v57 = vadd.f32 1.0, %v3649_v30 }
 0xc13   :  { %3654 = vrcp.f32 %v1602_v28 }
 0xc14   :  { %3656 = vrcp.f32 %v1601_v57 }
 0xc17   :  { %v3651_v29 = vpop.eup %3650 }
 0xc18   :  { %v3653_v31 = vpop.eup %3652  ;;  %v1604_v0 = vadd.f32 1.0, %v3651_v29 }
 0xc19   :  { %v1603_v36 = vadd.f32 1.0, %v3653_v31 }
 0xc1a   :  { %3658 = vrcp.f32 %v1604_v0 }
 0xc1b   :  { %3660 = vrcp.f32 %v1603_v36 }
 0xc1d   :  { %v4471_v58 = vpop.eup %3654 }
 0xc1e   :  { %v4473_v38 = vpop.eup %3656  ;;  %v1614_v43 = vmul.f32 2.0, %v4471_v58 }
 0xc1f   :  { %v1613_v47 = vmul.f32 2.0, %v4473_v38 }
 0xc20   :  { %v3085_v3 = vadd.f32 -1.0, %v1614_v43 }
 0xc21   :  { %v3084_v9 = vadd.f32 -1.0, %v1613_v47 }
 0xc22   :  { %1627 = vrot.lane.b32.xlu1 %v3085_v3, %s3954_s24 }
 0xc23   :  { %1625 = vrot.lane.b32.xlu0 %v3084_v9, %s3954_s24 }
 0xc24   :  { %v4479_v13 = vpop.eup %3658 }
 0xc25   :  { %v4481_v5 = vpop.eup %3660  ;;  %v1616_v6 = vmul.f32 2.0, %v4479_v13 }
 0xc26   :  { %v1615_v14 = vmul.f32 2.0, %v4481_v5 }
 0xc27   :  { %v3087_v50 = vadd.f32 -1.0, %v1616_v6 }
 0xc28   :  { %v3086_v1 = vadd.f32 -1.0, %v1615_v14 }
 0xc29   :  { %1631 = vrot.lane.b32.xlu1 %v3087_v50, %s3954_s24 }
 0xc2a   :  { %1629 = vrot.lane.b32.xlu0 %v3086_v1, %s3954_s24 }
 0xc94   :  { %v1628_v7 = vpop.permute.xlu1 %1627 }
 0xc95   :  { %v1638_v32 = vmul.f32 %v4471_v58, %v1628_v7  ;;  %v1626_v54 = vpop.permute.xlu0 %1625 }
 0xc96   :  { %v1637_v10 = vmul.f32 %v4473_v38, %v1626_v54 }
 0xc97   :  { %1647 = vrot.lane.b32.xlu1 %v1638_v32, %s3951_s5 }
 0xc98   :  { %1645 = vrot.lane.b32.xlu0 %v1637_v10, %s3951_s5 }
 0xc9b   :  { %v1632_v39 = vpop.permute.xlu1 %1631 }
 0xc9c   :  { %v1640_v11 = vmul.f32 %v4479_v13, %v1632_v39  ;;  %v1630_v12 = vpop.permute.xlu0 %1629 }
 0xc9d   :  { %v1639_v15 = vmul.f32 %v4481_v5, %v1630_v12 }
 0xc9e   :  { %1651 = vrot.lane.b32.xlu1 %v1640_v11, %s3951_s5 }
 0xc9f   :  { %1649 = vrot.lane.b32.xlu0 %v1639_v15, %s3951_s5  ;;  %v1472_v15 = vadd.f32 1e-05, %v4423_v63  ;;  %v1473_v63 = vadd.f32 1e-05, %v4437_v21 }
 0xd09   :  { %v1648_v16 = vpop.permute.xlu1 %1647 }
 0xd0a   :  { %v1658_v17 = vadd.f32 %v4471_v58, %v1648_v16  ;;  %v1646_v59 = vpop.permute.xlu0 %1645  ;;  %v1471_v16 = vadd.f32 1e-05, %v4425_v4  ;;  %v1204_v4 = vadd.f32 1e-05, %v4370_v34  ;;  %v3092_v34 = vld [vmem:[%s4781_s11 + $0x60] sm:$0xff] }
 0xd0b   :  { %v1657_v20 = vadd.f32 %v4473_v38, %v1646_v59 }
 0xd0c   :  { %3662 = vtanh.f32 %v1658_v17  ;;  %v1686_v53 = vadd.f32 2.0, %v1658_v17  ;;  %v1202_v17 = vadd.f32 1e-05, %v4353_v19  ;;  %v1203_v19 = vadd.f32 1e-05, %v4362_v35  ;;  %v3093_v35 = vld [vmem:[%s4781_s11 + $0x68] sm:$0xff] }
 0xd0d   :  { %3664 = vtanh.f32 %v1657_v20  ;;  %v1685_v46 = vadd.f32 2.0, %v1657_v20  ;;  %v1201_v20 = vadd.f32 1e-05, %v4356_v23 }
 0xd0e   :  { %v3089_v30 = vmul.f32 -1.442695, %v1686_v53 }
 0xd0f   :  { %v3088_v28 = vmul.f32 -1.442695, %v1685_v46  ;;  %v1476_v46 = vmul.f32 %v1472_v15, %v1202_v17 }
 0xd10   :  { %3666 = vpow2.f32 %v3089_v30  ;;  %v1652_v57 = vpop.permute.xlu1 %1651 }
 0xd11   :  { %3668 = vpow2.f32 %v3088_v28  ;;  %v1660_v29 = vadd.f32 %v4479_v13, %v1652_v57  ;;  %v1650_v31 = vpop.permute.xlu0 %1649  ;;  %v1475_v28 = vmul.f32 %v1471_v16, %v1201_v20 }
 0xd12   :  { %v1659_v0 = vadd.f32 %v4481_v5, %v1650_v31 }
 0xd13   :  { %3670 = vtanh.f32 %v1660_v29  ;;  %v1688_v36 = vadd.f32 2.0, %v1660_v29 }
 0xd14   :  { %3672 = vtanh.f32 %v1659_v0  ;;  %v1687_v43 = vadd.f32 2.0, %v1659_v0  ;;  %v1474_v0 = vadd.f32 1e-05, %v4433_v60 }
 0xd15   :  { %v3091_v47 = vmul.f32 -1.442695, %v1688_v36 }
 0xd16   :  { %v3663_v3 = vpop.eup %3662  ;;  %v3090_v9 = vmul.f32 -1.442695, %v1687_v43  ;;  %v1478_v23 = vmul.f32 %v1474_v0, %v1204_v4 }
 0xd17   :  { %v3665_v6 = vpop.eup %3664  ;;  %3674 = vpow2.f32 %v3091_v47  ;;  %1671 = vrot.lane.b32.xlu1 %v3663_v3, %s3954_s24  ;;  %v1477_v3 = vmul.f32 %v1473_v63, %v1203_v19 }
 0xd18   :  { %3676 = vpow2.f32 %v3090_v9  ;;  %1669 = vrot.lane.b32.xlu0 %v3665_v6, %s3954_s24 }
 0xd1a   :  { %v3667_v14 = vpop.eup %3666 }
 0xd1b   :  { %v3669_v50 = vpop.eup %3668  ;;  %v1702_v1 = vadd.f32 1.0, %v3667_v14 }
 0xd1c   :  { %v1701_v7 = vadd.f32 1.0, %v3669_v50 }
 0xd1d   :  { %v3671_v32 = vpop.eup %3670  ;;  %3678 = vrcp.f32 %v1702_v1 }
 0xd1e   :  { %v3673_v54 = vpop.eup %3672  ;;  %3680 = vrcp.f32 %v1701_v7  ;;  %1675 = vrot.lane.b32.xlu1 %v3671_v32, %s3954_s24  ;;  %v3094_v7 = vld [vmem:[%s4781_s11 + $0x70] sm:$0xff]  ;;  %v3484_v32 = vpack.c.bf16 %v3093_v35, %v3092_v34 }
 0xd1f   :  { %1673 = vrot.lane.b32.xlu0 %v3673_v54, %s3954_s24 }
 0xd20   :  { %3485 = vmatprep.subr.bf16.mxu0 %v3484_v32 }
 0xd21   :  { %v3675_v10 = vpop.eup %3674  ;;  %3487 = vmatpush3.bf16.msra.mxu0 %v3484_v32 }
 0xd22   :  { %v3677_v39 = vpop.eup %3676  ;;  %v1704_v11 = vadd.f32 1.0, %v3675_v10 }
 0xd23   :  { %v1703_v12 = vadd.f32 1.0, %v3677_v39 }
 0xd24   :  { %3682 = vrcp.f32 %v1704_v11 }
 0xd25   :  { %3684 = vrcp.f32 %v1703_v12 }
 0xd27   :  { %v3679_v59 = vpop.eup %3678 }
 0xd28   :  { %v3681_v53 = vpop.eup %3680  ;;  %v1746_v30 = vadd.f32 1e-05, %v3679_v59  ;;  %v1718_v12 = vsub.f32 1.0, %v3679_v59  ;;  %v1714_v17 = vmul.f32 %v3679_v59, %v4435_v8 }
 0xd29   :  { %v1745_v57 = vadd.f32 1e-05, %v3681_v53  ;;  %v1717_v16 = vsub.f32 1.0, %v3681_v53 }
 0xd2a   :  { %v4507_v29 = vmul.f32 %v1746_v30, %v1476_v46  ;;  %v1713_v30 = vmul.f32 %v3681_v53, %v4439_v25 }
 0xd2b   :  { %v4509_v31 = vmul.f32 %v1745_v57, %v1475_v28 }
 0xd2e   :  { %v3683_v36 = vpop.eup %3682 }
 0xd2f   :  { %v3685_v43 = vpop.eup %3684  ;;  %v1748_v47 = vadd.f32 1e-05, %v3683_v36  ;;  %v1716_v8 = vmul.f32 %v3683_v36, %v4451_v56 }
 0xd30   :  { %v1747_v9 = vadd.f32 1e-05, %v3685_v43  ;;  %v1719_v63 = vsub.f32 1.0, %v3685_v43  ;;  %v1715_v25 = vmul.f32 %v3685_v43, %v4453_v62  ;;  %v748_v62 = vsub.s32 3, %v4284_v49  ;;  %v3754_v43 = vld [vmem:[%s4783_s13] sm:$0xf] }
 0xd31   :  { %v4515_v6 = vmul.f32 %v1748_v47, %v1478_v23 }
 0xd32   :  { %v4517_v14 = vmul.f32 %v1747_v9, %v1477_v3  ;;  %v749_v9 = vrot.slane %v3754_v43, %v748_v62 }
 0xd34   :  { %v936_v49 = vadd.f32 %v4302_v61, %v749_v9 }
 0xd89   :  { %v1672_v50 = vpop.permute.xlu1 %1671 }
 0xd8a   :  { %v1682_v1 = vmul.f32 %v4471_v58, %v1672_v50  ;;  %v1670_v60 = vpop.permute.xlu0 %1669  ;;  %v3095_v58 = vld [vmem:[%s4781_s11 + $0x78] sm:$0xff]  ;;  %v930_v50 = vadd.f32 %v4290_v55, %v749_v9 }
 0xd8b   :  { %v1681_v21 = vmul.f32 %v4473_v38, %v1670_v60  ;;  %v3488_v38 = vpack.c.bf16 %v3095_v58, %v3094_v7  ;;  %v942_v58 = vadd.f32 %v4309_v2, %v749_v9 }
 0xd8c   :  { %1727 = vrot.lane.b32.xlu1 %v1682_v1, %s3954_s24  ;;  %v924_v1 = vadd.f32 %v4281_v48, %v749_v9 }
 0xd8d   :  { %1725 = vrot.lane.b32.xlu0 %v1681_v21, %s3954_s24  ;;  %3489 = vmatprep.subr.bf16.mxu0 %v3488_v38 }
 0xd8e   :  { %3491 = vmatpush3.bf16.msra.mxu0 %v3488_v38 }
 0xd90   :  { %v1676_v54 = vpop.permute.xlu1 %1675 }
 0xd91   :  { %v1684_v10 = vmul.f32 %v4479_v13, %v1676_v54  ;;  %v1674_v39 = vpop.permute.xlu0 %1673 }
 0xd92   :  { %v1683_v11 = vmul.f32 %v4481_v5, %v1674_v39  ;;  %v1720_v5 = vsub.f32 1.0, %v3683_v36 }
 0xd93   :  { %1731 = vrot.lane.b32.xlu1 %v1684_v10, %s3954_s24 }
 0xd94   :  { %1729 = vrot.lane.b32.xlu0 %v1683_v11, %s3954_s24 }
 0xdfe   :  { %v1728_v15 = vpop.permute.xlu1 %1727 }
 0xdff   :  { %v1738_v20 = vmul.f32 %v1728_v15, %v1718_v12  ;;  %v1726_v46 = vpop.permute.xlu0 %1725 }
 0xe00   :  { %v1737_v28 = vmul.f32 %v1726_v46, %v1717_v16 }
 0xe01   :  { %v4541_v57 = vadd.f32 %v1738_v20, %v1714_v17 }
 0xe02   :  { %v4543_v13 = vadd.f32 %v1737_v28, %v1713_v30 }
 0xe03   :  { %1764 = vrot.lane.b32.xlu1 %v4541_v57, %s3955_s29 }
 0xe04   :  { %1762 = vrot.lane.b32.xlu0 %v4543_v13, %s3955_s29 }
 0xe05   :  { %v1732_v0 = vpop.permute.xlu1 %1731 }
 0xe06   :  { %v1740_v59 = vmul.f32 %v1732_v0, %v1720_v5  ;;  %v1730_v4 = vpop.permute.xlu0 %1729 }
 0xe07   :  { %v1739_v53 = vmul.f32 %v1730_v4, %v1719_v63 }
 0xe08   :  { %v4551_v19 = vadd.f32 %v1740_v59, %v1716_v8 }
 0xe09   :  { %v4553_v23 = vadd.f32 %v1739_v53, %v1715_v25 }
 0xe0a   :  { %1768 = vrot.lane.b32.xlu1 %v4551_v19, %s3955_s29 }
 0xe0b   :  { %1766 = vrot.lane.b32.xlu0 %v4553_v23, %s3955_s29 }
 0xe75   :  { %v1765_v3 = vpop.permute.xlu1 %1764 }
 0xe76   :  { %v1763_v47 = vpop.permute.xlu0 %1762 }
 0xe77   :  { %3342 = vmatprep.mubr.msk.f32.mxu0 %vm610_vm2, %v1763_v47 }
 0xe78   :  { %3343 = vmatmul.mubr.msk.f32.vlgmr.msra.gmra.mrb[20].mxu0 %vm610_vm2, %v1765_v3 }
 0xe7c   :  { %v1769_v36 = vpop.permute.xlu1 %1768 }
 0xe7d   :  { %v1767_v56 = vpop.permute.xlu0 %1766 }
 0xe7e   :  { %3345 = vmatprep.mubr.msk.f32.mxu0 %vm610_vm2, %v1767_v56 }
 0xe7f   :  { %3346 = vmatmul.mubr.msk.f32.gmra.mrb[22].mxu0 %vm610_vm2, %v1769_v36 }
 0xe80   :  { %3359 = vmatprep.mubr.msk.f32.mxu0 %vm151_vm0, %v4183_v24 }
 0xf4b   :  { %v3344_v60 = vpop.f32.mrb[20].mxu0 }
 0xf4c   :  { %v1850_v21 = vadd.f32 %v3344_v60, %v930_v50  ;;  %v1844_v34 = vpop.f32.mrb[21].mxu0 }
 0xf4d   :  { %v1845_v35 = vadd.f32 %v1844_v34, %v924_v1 }
 0xf4e   :  { %v3101_v7 = vmul.f32 -1.442695, %v1850_v21 }
 0xf4f   :  { %v3100_v32 = vmul.f32 -1.442695, %v1845_v35 }
 0xf50   :  { %3686 = vpow2.f32 %v3101_v7 }
 0xf51   :  { %3688 = vpow2.f32 %v3100_v32 }
 0xf52   :  { %v3347_v38 = vpop.f32.mrb[22].mxu0 }
 0xf53   :  { %v1860_v54 = vadd.f32 %v3347_v38, %v942_v58  ;;  %v1854_v10 = vpop.f32.mrb[23].mxu0 }
 0xf54   :  { %v1855_v39 = vadd.f32 %v1854_v10, %v936_v49 }
 0xf55   :  { %v3103_v11 = vmul.f32 -1.442695, %v1860_v54 }
 0xf56   :  { %v3102_v55 = vmul.f32 -1.442695, %v1855_v39 }
 0xf57   :  { %3690 = vpow2.f32 %v3103_v11 }
 0xf58   :  { %3692 = vpow2.f32 %v3102_v55 }
 0xf5a   :  { %v3687_v48 = vpop.eup %3686 }
 0xf5b   :  { %v3689_v12 = vpop.eup %3688  ;;  %v1876_v15 = vadd.f32 1.0, %v3687_v48 }
 0xf5c   :  { %v1875_v16 = vadd.f32 1.0, %v3689_v12 }
 0xf5d   :  { %3694 = vrcp.f32 %v1876_v15 }
 0xf5e   :  { %3696 = vrcp.f32 %v1875_v16 }
 0xf61   :  { %v3691_v17 = vpop.eup %3690 }
 0xf62   :  { %v3693_v20 = vpop.eup %3692  ;;  %v1878_v2 = vadd.f32 1.0, %v3691_v17 }
 0xf63   :  { %v1877_v46 = vadd.f32 1.0, %v3693_v20 }
 0xf64   :  { %3698 = vrcp.f32 %v1878_v2 }
 0xf65   :  { %3700 = vrcp.f32 %v1877_v46 }
 0xf67   :  { %v4573_v61 = vpop.eup %3694 }
 0xf68   :  { %v4575_v30 = vpop.eup %3696  ;;  %v1888_v28 = vmul.f32 2.0, %v4573_v61 }
 0xf69   :  { %v1887_v5 = vmul.f32 2.0, %v4575_v30 }
 0xf6a   :  { %v3105_v0 = vadd.f32 -1.0, %v1888_v28 }
 0xf6b   :  { %v3104_v63 = vadd.f32 -1.0, %v1887_v5 }
 0xf6c   :  { %1901 = vrot.lane.b32.xlu1 %v3105_v0, %s3954_s24 }
 0xf6d   :  { %1899 = vrot.lane.b32.xlu0 %v3104_v63, %s3954_s24 }
 0xf6e   :  { %v4581_v8 = vpop.eup %3698 }
 0xf6f   :  { %v4583_v59 = vpop.eup %3700  ;;  %v1890_v4 = vmul.f32 2.0, %v4581_v8 }
 0xf70   :  { %v1889_v25 = vmul.f32 2.0, %v4583_v59 }
 0xf71   :  { %v3107_v53 = vadd.f32 -1.0, %v1890_v4 }
 0xf72   :  { %v3106_v47 = vadd.f32 -1.0, %v1889_v25 }
 0xf73   :  { %1905 = vrot.lane.b32.xlu1 %v3107_v53, %s3954_s24 }
 0xf74   :  { %1903 = vrot.lane.b32.xlu0 %v3106_v47, %s3954_s24 }
 0xfde   :  { %v1902_v3 = vpop.permute.xlu1 %1901 }
 0xfdf   :  { %v1912_v56 = vmul.f32 %v4573_v61, %v1902_v3  ;;  %v1900_v36 = vpop.permute.xlu0 %1899 }
 0xfe0   :  { %v1911_v62 = vmul.f32 %v4575_v30, %v1900_v36 }
 0xfe1   :  { %1921 = vrot.lane.b32.xlu1 %v1912_v56, %s3951_s5 }
 0xfe2   :  { %1919 = vrot.lane.b32.xlu0 %v1911_v62, %s3951_s5 }
 0xfe5   :  { %v1906_v43 = vpop.permute.xlu1 %1905 }
 0xfe6   :  { %v1914_v9 = vmul.f32 %v4581_v8, %v1906_v43  ;;  %v1904_v50 = vpop.permute.xlu0 %1903 }
 0xfe7   :  { %v1913_v1 = vmul.f32 %v4583_v59, %v1904_v50 }
 0xfe8   :  { %1925 = vrot.lane.b32.xlu1 %v1914_v9, %s3951_s5 }
 0xfe9   :  { %1923 = vrot.lane.b32.xlu0 %v1913_v1, %s3951_s5 }
0x1053   :  { %v1922_v60 = vpop.permute.xlu1 %1921 }
0x1054   :  { %v1932_v21 = vadd.f32 %v4573_v61, %v1922_v60  ;;  %v1920_v34 = vpop.permute.xlu0 %1919 }
0x1055   :  { %v1931_v35 = vadd.f32 %v4575_v30, %v1920_v34 }
0x1056   :  { %3702 = vtanh.f32 %v1932_v21  ;;  %v1960_v7 = vadd.f32 2.0, %v1932_v21 }
0x1057   :  { %3704 = vtanh.f32 %v1931_v35  ;;  %v1959_v32 = vadd.f32 2.0, %v1931_v35 }
0x1058   :  { %v3109_v58 = vmul.f32 -1.442695, %v1960_v7 }
0x1059   :  { %v3108_v49 = vmul.f32 -1.442695, %v1959_v32 }
0x105a   :  { %3706 = vpow2.f32 %v3109_v58  ;;  %v1926_v38 = vpop.permute.xlu1 %1925 }
0x105b   :  { %3708 = vpow2.f32 %v3108_v49  ;;  %v1934_v54 = vadd.f32 %v4581_v8, %v1926_v38  ;;  %v1924_v10 = vpop.permute.xlu0 %1923 }
0x105c   :  { %v1933_v39 = vadd.f32 %v4583_v59, %v1924_v10 }
0x105d   :  { %3710 = vtanh.f32 %v1934_v54  ;;  %v1962_v11 = vadd.f32 2.0, %v1934_v54 }
0x105e   :  { %3712 = vtanh.f32 %v1933_v39  ;;  %v1961_v55 = vadd.f32 2.0, %v1933_v39 }
0x105f   :  { %v3111_v48 = vmul.f32 -1.442695, %v1962_v11 }
0x1060   :  { %v3703_v12 = vpop.eup %3702  ;;  %v3110_v15 = vmul.f32 -1.442695, %v1961_v55 }
0x1061   :  { %v3705_v16 = vpop.eup %3704  ;;  %3714 = vpow2.f32 %v3111_v48  ;;  %1945 = vrot.lane.b32.xlu1 %v3703_v12, %s3954_s24 }
0x1062   :  { %3716 = vpow2.f32 %v3110_v15  ;;  %1943 = vrot.lane.b32.xlu0 %v3705_v16, %s3954_s24  ;;  %v713_v16 = vmul.f32 -0.5, %v4247_v37 }
0x1064   :  { %v3707_v17 = vpop.eup %3706 }
0x1065   :  { %v3709_v20 = vpop.eup %3708  ;;  %v1976_v2 = vadd.f32 1.0, %v3707_v17 }
0x1066   :  { %v1975_v46 = vadd.f32 1.0, %v3709_v20 }
0x1067   :  { %v3711_v28 = vpop.eup %3710  ;;  %3718 = vrcp.f32 %v1976_v2 }
0x1068   :  { %v3713_v5 = vpop.eup %3712  ;;  %3720 = vrcp.f32 %v1975_v46  ;;  %1949 = vrot.lane.b32.xlu1 %v3711_v28, %s3954_s24  ;;  %v712_v46 = vmul.f32 -0.5, %v4239_v33 }
0x1069   :  { %1947 = vrot.lane.b32.xlu0 %v3713_v5, %s3954_s24 }
0x106b   :  { %v3715_v0 = vpop.eup %3714 }
0x106c   :  { %v3717_v63 = vpop.eup %3716  ;;  %v1978_v4 = vadd.f32 1.0, %v3715_v0 }
0x106d   :  { %v1977_v25 = vadd.f32 1.0, %v3717_v63 }
0x106e   :  { %3722 = vrcp.f32 %v1978_v4 }
0x106f   :  { %3724 = vrcp.f32 %v1977_v25 }
0x1071   :  { %v3719_v53 = vpop.eup %3718 }
0x1072   :  { %v3721_v47 = vpop.eup %3720  ;;  %v2020_v3 = vadd.f32 1e-05, %v3719_v53  ;;  %v1988_v54 = vmul.f32 %v3719_v53, %v4541_v57 }
0x1073   :  { %v2019_v56 = vadd.f32 1e-05, %v3721_v47  ;;  %v1987_v39 = vmul.f32 %v3721_v47, %v4543_v13 }
0x1074   :  { %v2024_v36 = vmul.f32 %v2020_v3, %v4507_v29 }
0x1075   :  { %v2023_v62 = vmul.f32 %v2019_v56, %v4509_v31 }
0x1076   :  { %3726 = vlog2.f32 %v2024_v36 }
0x1077   :  { %3728 = vlog2.f32 %v2023_v62 }
0x1078   :  { %v3723_v43 = vpop.eup %3722 }
0x1079   :  { %v3725_v9 = vpop.eup %3724  ;;  %v2022_v50 = vadd.f32 1e-05, %v3723_v43  ;;  %v1994_v20 = vsub.f32 1.0, %v3723_v43  ;;  %v1990_v13 = vmul.f32 %v3723_v43, %v4551_v19  ;;  %v715_v19 = vmul.f32 -0.5, %v4263_v41  ;;  %v2222_v41 = vld [vmem:[%s4777_s7 + $0x8] sm:$0xff] }
0x107a   :  { %v2021_v1 = vadd.f32 1e-05, %v3725_v9  ;;  %v1993_v57 = vsub.f32 1.0, %v3725_v9  ;;  %v1989_v37 = vmul.f32 %v3725_v9, %v4553_v23 }
0x107b   :  { %v2026_v60 = vmul.f32 %v2022_v50, %v4515_v6  ;;  %v1992_v6 = vsub.f32 1.0, %v3719_v53 }
0x107c   :  { %v2025_v21 = vmul.f32 %v2021_v1, %v4517_v14 }
0x107d   :  { %3730 = vlog2.f32 %v2026_v60 }
0x107e   :  { %3732 = vlog2.f32 %v2025_v21 }
0x1080   :  { %v3727_v14 = vpop.eup %3726 }
0x1081   :  { %v3729_v38 = vpop.eup %3728  ;;  %v2030_v55 = vmul.f32 0.6931472, %v3727_v14 }
0x1082   :  { %v2028_v12 = vmul.f32 0.6931472, %v3729_v38  ;;  %v2224_v38 = vld [vmem:[%s4777_s7 + $0x18] sm:$0xff] }
0x1083   :  { %v2036_v0 = vsub.f32 %v713_v16, %v2030_v55  ;;  %v3116_v16 = vld [vmem:[#allocation2] ss:$0 sm:$0xff] }
0x1087   :  { %v3731_v28 = vpop.eup %3730 }
0x1088   :  { %v3733_v4 = vpop.eup %3732  ;;  %v2034_v50 = vmul.f32 0.6931472, %v3731_v28 }
0x1089   :  { %v2032_v60 = vmul.f32 0.6931472, %v3733_v4 }
0x10d3   :  { %v1946_v34 = vpop.permute.xlu1 %1945 }
0x10d4   :  { %v1956_v35 = vmul.f32 %v4573_v61, %v1946_v34  ;;  %v1944_v7 = vpop.permute.xlu0 %1943 }
0x10d5   :  { %v1955_v32 = vmul.f32 %v4575_v30, %v1944_v7  ;;  %v1991_v30 = vsub.f32 1.0, %v3721_v47  ;;  %v2035_v47 = vsub.f32 %v712_v46, %v2028_v12 }
0x10d6   :  { %2001 = vrot.lane.b32.xlu1 %v1956_v35, %s3954_s24  ;;  %v714_v35 = vmul.f32 -0.5, %v4255_v40 }
0x10d7   :  { %1999 = vrot.lane.b32.xlu0 %v1955_v32, %s3954_s24  ;;  %v2038_v32 = vsub.f32 %v715_v19, %v2034_v50 }
0x10d8   :  { %v2037_v23 = vsub.f32 %v714_v35, %v2032_v60 }
0x10da   :  { %v1950_v29 = vpop.permute.xlu1 %1949 }
0x10db   :  { %v1958_v31 = vmul.f32 %v4581_v8, %v1950_v29  ;;  %v1948_v58 = vpop.permute.xlu0 %1947 }
0x10dc   :  { %v1957_v49 = vmul.f32 %v4583_v59, %v1948_v58 }
0x10dd   :  { %2005 = vrot.lane.b32.xlu1 %v1958_v31, %s3954_s24 }
0x10de   :  { %2003 = vrot.lane.b32.xlu0 %v1957_v49, %s3954_s24  ;;  %v2221_v49 = vld [vmem:[%s4777_s7] sm:$0xff] }
0x1148   :  { %v2002_v61 = vpop.permute.xlu1 %2001 }
0x1149   :  { %v2012_v10 = vmul.f32 %v2002_v61, %v1992_v6  ;;  %v2000_v8 = vpop.permute.xlu0 %1999  ;;  %v3500_v61 = vpack.c.bf16 %v2222_v41, %v2221_v49 }
0x114a   :  { %v2011_v59 = vmul.f32 %v2000_v8, %v1991_v30  ;;  %v2223_v30 = vld [vmem:[%s4777_s7 + $0x10] sm:$0xff] }
0x114b   :  { %v2016_v11 = vadd.f32 %v2012_v10, %v1988_v54  ;;  %v3504_v10 = vpack.c.bf16 %v2224_v38, %v2223_v30  ;;  %v3957_v30 = vmov 0.0|0.0   ;;  %v2677_v38 = vld [vmem:[#allocation13 + $0x10] sm:$0xff] }
0x114c   :  { %v2015_v48 = vadd.f32 %v2011_v59, %v1987_v39 }
0x114d   :  { %v2040_v15 = vmul.f32 0.5, %v2016_v11 }
0x114e   :  { %v2039_v17 = vmul.f32 0.5, %v2015_v48  ;;  %v3546_v2 = vpack.i.bf16 %v2016_v11, %v2015_v48 }
0x114f   :  { %v2006_v5 = vpop.permute.xlu1 %2005  ;;  %v2044_v63 = vmul.f32 %v2040_v15, %v2016_v11  ;;  %v3956_v15 = vmov 0  }
0x1150   :  { %v2014_v25 = vmul.f32 %v2006_v5, %v1994_v20  ;;  %v2004_v53 = vpop.permute.xlu0 %2003  ;;  %3547 = vrot.lane.b32.xlu0 %v3546_v2, %s3955_s29  ;;  %v2043_v3 = vmul.f32 %v2039_v17, %v2015_v48  ;;  %3556 = vset.pattern.permute.xlu1 %v3956_v15 }
0x1151   :  { %v2013_v56 = vmul.f32 %v2004_v53, %v1993_v57  ;;  %v4624_v36 = vadd.f32 %v2044_v63, %v2036_v0  ;;  %3557 = vset.pattern.permute.xlu0 %v3956_v15 }
0x1152   :  { %v2018_v33 = vadd.f32 %v2014_v25, %v1990_v13  ;;  %v4626_v62 = vadd.f32 %v2043_v3, %v2035_v47 }
0x1153   :  { %v2017_v1 = vadd.f32 %v2013_v56, %v1989_v37 }
0x1154   :  { %v2042_v21 = vmul.f32 0.5, %v2018_v33 }
0x1155   :  { %v2041_v43 = vmul.f32 0.5, %v2017_v1  ;;  %v3551_v34 = vpack.i.bf16 %v2018_v33, %v2017_v1 }
0x1156   :  { %v2046_v7 = vmul.f32 %v2042_v21, %v2018_v33 }
0x1157   :  { %3552 = vrot.lane.b32.xlu1 %v3551_v34, %s3955_s29  ;;  %v2045_v9 = vmul.f32 %v2041_v43, %v2017_v1 }
0x1158   :  { %v4631_v29 = vadd.f32 %v2046_v7, %v2038_v32 }
0x1159   :  { %v4633_v31 = vadd.f32 %v2045_v9, %v2037_v23 }
0x11c2   :  { %v3548_v58 = vpop.permute.xlu0 %3547 }
0x11c3   :  { %v3550_v40 = vunpack.i.h.bf16 %v3548_v58  ;;  %v3549_v6 = vunpack.i.l.bf16 %v3548_v58 }
0x11c5   :  { %v3492_v14 = vpack.c.bf16 %v3550_v40, %v3549_v6  ;;  %v2675_v6 = vld [vmem:[#allocation13] sm:$0xff] }
0x11c7   :  { %3493 = vmatprep.subr.bf16.mxu1 %v3492_v14 }
0x11c8   :  { %3495 = vmatpush3.bf16.msra.mxu1 %v3492_v14  ;;  %v2676_v14 = vld [vmem:[#allocation13 + $0x8] sm:$0xff] }
0x11c9   :  { %v3553_v54 = vpop.permute.xlu1 %3552  ;;  %3501 = vmatprep.subr.bf16.mxu1 %v3500_v61 }
0x11ca   :  { %v3555_v8 = vunpack.i.h.bf16 %v3553_v54  ;;  %v3554_v39 = vunpack.i.l.bf16 %v3553_v54 }
0x11cb   :  { %3353 = vmatmul.mubr.msk.f32.vlgmr.msra.gmra.mrb[24].mxu1 %vm151_vm0, %v4185_v26 }
0x11cc   :  { %v3496_v59 = vpack.c.bf16 %v3555_v8, %v3554_v39  ;;  %3503 = vmatpush3.bf16.msra.mxu1 %v3500_v61  ;;  %v3517_v61 = vpack.c.bf16 %v2676_v14, %v2675_v6 }
0x11cd   :  { %3505 = vmatprep.subr.bf16.mxu1 %v3504_v10 }
0x11ce   :  { %3497 = vmatprep.subr.bf16.mxu0 %v3496_v59 }
0x11cf   :  { %3499 = vmatpush3.bf16.msra.mxu0 %v3496_v59 }
0x11d0   :  { %3507 = vmatpush3.bf16.msra.mxu1 %v3504_v10 }
0x11d1   :  { %3516 = vmatprep.subr.bf16.mxu1 %v3957_v30 }
0x11d2   :  { %3360 = vmatmul.mubr.msk.f32.vlgmr.msra.gmra.mrb[24].mxu0 %vm151_vm0, %v4189_v27 }
0x11d3   :  { %3380 = vmatprep.mubr.msk.f32.mxu0 %vm151_vm0, %v4179_v22  ;;  %v3121_v22 = vld [vmem:[#allocation3] ss:$0 sm:$0xff] }
0x129e   :  { %v3354_v11 = vpop.f32.mrb[24].mxu1 }
0x129f   :  { %v2129_v55 = vpop.f32.mrb[25].mxu1 }
0x12a0   :  { %3370 = vmatprep.mubr.msk.f32.mxu1 %vm610_vm2, %v2129_v55 }
0x12a1   :  { %3371 = vmatmul.mubr.msk.f32.vlgmr.msra.gmra.mrb[26].mxu1 %vm610_vm2, %v3354_v11 }
0x12a2   :  { %3518 = vmatpush3.bf16.msra.mxu1 %v3517_v61 }
0x12a3   :  { %3519 = vmatprep.subr.bf16.mxu1 %v3957_v30 }
0x12a5   :  { %v3361_v48 = vpop.f32.mrb[24].mxu0 }
0x12a6   :  { %v2212_v12 = vpop.f32.mrb[25].mxu0 }
0x12a7   :  { %3373 = vmatprep.mubr.msk.f32.mxu1 %vm610_vm2, %v2212_v12 }
0x12a8   :  { %3374 = vmatmul.mubr.msk.f32.gmra.mrb[28].mxu1 %vm610_vm2, %v3361_v48 }
0x12a9   :  { %3406 = vmatprep.mubr.msk.f32.mxu1 %vm3958_vm3, %v3953_v18 }
0x1374   :  { %v3372_v17 = vpop.f32.mrb[26].mxu1 }
0x1375   :  { %v2316_v20 = vadd.f32 %v3372_v17, %v3116_v16  ;;  %v2310_v2 = vpop.f32.mrb[27].mxu1 }
0x1376   :  { %v2311_v46 = vadd.f32 %v3116_v16, %v2310_v2 }
0x1377   :  { %v2330_v28 = vmax.f32 %v2316_v20, 0.0 }
0x1378   :  { %v2329_v5 = vmax.f32 %v2311_v46, 0.0 }
0x1379   :  { %v2341_v57 = vmul.f32 %v3121_v22, %v2330_v28 }
0x137a   :  { %v2340_v0 = vmul.f32 %v3121_v22, %v2329_v5 }
0x137b   :  { %v3123_v63 = vmul.f32 -1.442695, %v2341_v57  ;;  %v3375_v4 = vpop.f32.mrb[28].mxu1 }
0x137c   :  { %v3122_v13 = vmul.f32 -1.442695, %v2340_v0  ;;  %v2326_v25 = vadd.f32 %v3375_v4, %v3116_v16  ;;  %v2320_v53 = vpop.f32.mrb[29].mxu1 }
0x137d   :  { %3734 = vpow2.f32 %v3123_v63  ;;  %v2321_v47 = vadd.f32 %v3116_v16, %v2320_v53 }
0x137e   :  { %3736 = vpow2.f32 %v3122_v13  ;;  %v2332_v3 = vmax.f32 %v2326_v25, 0.0 }
0x137f   :  { %v2331_v37 = vmax.f32 %v2321_v47, 0.0 }
0x1380   :  { %v2343_v56 = vmul.f32 %v3121_v22, %v2332_v3 }
0x1381   :  { %v2342_v33 = vmul.f32 %v3121_v22, %v2331_v37  ;;  %v2760_v37 = vld [vmem:[%s4786_s17] sm:$0xff] }
0x1382   :  { %v3125_v50 = vmul.f32 -1.442695, %v2343_v56  ;;  %v2761_v56 = vld [vmem:[%s4786_s17 + $0x8] sm:$0xff] }
0x1383   :  { %v3124_v1 = vmul.f32 -1.442695, %v2342_v33 }
0x1384   :  { %3738 = vpow2.f32 %v3125_v50  ;;  %v3523_v50 = vpack.c.bf16 %v2761_v56, %v2760_v37  ;;  %v2860_v56 = vand.u32 127, %v734_v42 }
0x1385   :  { %3740 = vpow2.f32 %v3124_v1 }
0x1387   :  { %v3735_v60 = vpop.eup %3734 }
0x1388   :  { %v3737_v21 = vpop.eup %3736  ;;  %v2357_v19 = vadd.f32 1.0, %v3735_v60 }
0x1389   :  { %v2356_v43 = vadd.f32 1.0, %v3737_v21 }
0x138a   :  { %3742 = vrcp.f32 %v2357_v19  ;;  %v2762_v19 = vld [vmem:[%s4786_s17 + $0x10] sm:$0xff] }
0x138b   :  { %3744 = vrcp.f32 %v2356_v43  ;;  %v2763_v43 = vld [vmem:[%s4786_s17 + $0x18] sm:$0xff] }
0x138e   :  { %v3739_v34 = vpop.eup %3738 }
0x138f   :  { %v3741_v35 = vpop.eup %3740  ;;  %v2359_v7 = vadd.f32 1.0, %v3739_v34  ;;  %v3526_v34 = vpack.c.bf16 %v2763_v43, %v2762_v19 }
0x1390   :  { %v2358_v32 = vadd.f32 1.0, %v3741_v35  ;;  %v3136_v35 = vld [vmem:[%s4785_s16] ss:$0 sm:$0xff] }
0x1391   :  { %3746 = vrcp.f32 %v2359_v7 }
0x1392   :  { %3748 = vrcp.f32 %v2358_v32 }
0x1394   :  { %v3743_v23 = vpop.eup %3742 }
0x1395   :  { %v3745_v9 = vpop.eup %3744  ;;  %2639 = vperm.xlu1 %3556, %v3743_v23  }
0x1396   :  { %2634 = vperm.xlu0 %3557, %v3745_v9   ;;  %v3508_v58 = vpack.c.bf16 %v3743_v23, %v3745_v9 }
0x1398   :  { %3509 = vmatprep.subr.bf16.mxu0 %v3508_v58 }
0x1399   :  { %3511 = vmatpush3.bf16.msra.mxu0 %v3508_v58  ;;  %v3130_v58 = vld [vmem:[#allocation10] ss:$0 sm:$0xff] }
0x139b   :  { %v3747_v49 = vpop.eup %3746 }
0x139c   :  { %v3749_v41 = vpop.eup %3748  ;;  %3381 = vmatmul.mubr.msk.f32.vlgmr.msra.gmra.mrb[26].mxu0 %vm151_vm0, %v4185_v26  ;;  %2649 = vperm.xlu0 %3557, %v3747_v49   ;;  %v2678_v26 = vld [vmem:[#allocation13 + $0x18] sm:$0xff] }
0x139d   :  { %3387 = vmatprep.mubr.msk.f32.mxu0 %vm151_vm0, %v4183_v24  ;;  %2644 = vperm.xlu1 %3556, %v3749_v41   ;;  %v3512_v40 = vpack.c.bf16 %v3747_v49, %v3749_v41  ;;  %v3520_v54 = vpack.c.bf16 %v2678_v26, %v2677_v38  ;;  %v2518_v24 = vld [vmem:[#allocation9] sm:$0x1]  ;;  %v3138_v38 = vld [vmem:[%s4787_s18] ss:$0 sm:$0xff] }
0x139f   :  { %3513 = vmatprep.subr.bf16.mxu0 %v3512_v40  ;;  %3521 = vmatpush3.bf16.msra.mxu1 %v3520_v54 }
0x13a0   :  { %3515 = vmatpush3.bf16.msra.mxu0 %v3512_v40 }
0x13a1   :  { %3390 = vmatprep.subr.msk.mxu0 %vm2539_vm4, %v2518_v24 }
0x13a3   :  { %3388 = vmatmul.mubr.msk.f32.vlgmr.msra.gmra.mrb[28].mxu0 %vm151_vm0, %v4189_v27 }
0x13a4   :  { %3391 = vmatpush3.msk.msra.mxu0 %vm2539_vm4, %v2518_v24 }
0x13a5   :  { %3522 = vmatprep.subr.bf16.mxu0 %v3957_v30 }
0x1414   :  { %v2640_v27 = vpop.permute.xlu1 %2639 }
0x1415   :  { %v2653_v10 = vmul.f32 %v2640_v27, %v4200_v44  ;;  %v2635_v8 = vpop.permute.xlu0 %2634 }
0x1416   :  { %v2652_v39 = vmul.f32 %v2635_v8, %v4202_v45  ;;  %v2052_v8 = vadd.f32 0.91629076, %v4624_v36 }
0x1417   :  { %v2657_v59 = vsel %vm610_vm2, %v2653_v10, 0.0  ;;  %v2051_v10 = vadd.f32 0.91629076, %v4626_v62 }
0x1418   :  { %v2656_v11 = vsel %vm610_vm2, %v2652_v39, 0.0  ;;  %v2054_v39 = vadd.f32 0.91629076, %v4631_v29  ;;  %v4715_v29 = vld [vmem:[%s4803_s28] sm:$0x3] }
0x1419   :  { %v2658_v55 = vadd.f32 %v2657_v59, %v2656_v11 }
0x141b   :  { %v2659_v48 = vrot.slane %v2658_v55, 4  ;;  %v2650_v12 = vpop.permute.xlu0 %2649 }
0x141c   :  { %v2655_v15 = vmul.f32 %v2650_v12, %v4206_v51  ;;  %v2645_v16 = vpop.permute.xlu1 %2644 }
0x141d   :  { %v2660_v17 = vadd.f32 %v2659_v48, %v2658_v55  ;;  %v2654_v20 = vmul.f32 %v2645_v16, %v4208_v52 }
0x141e   :  { %v2666_v2 = vsel %vm610_vm2, %v2655_v15, 0.0 }
0x141f   :  { %v2665_v22 = vsel %vm610_vm2, %v2654_v20, 0.0  ;;  %v2661_v46 = vrot.slane %v2660_v17, 2 }
0x1420   :  { %v2667_v28 = vadd.f32 %v2666_v2, %v2665_v22 }
0x1421   :  { %v2662_v57 = vadd.f32 %v2661_v46, %v2660_v17 }
0x1422   :  { %v2668_v5 = vrot.slane %v2667_v28, 4 }
0x1423   :  { %v2663_v4 = vrot.slane %v2662_v57, 1 }
0x1424   :  { %v2669_v0 = vadd.f32 %v2668_v5, %v2667_v28 }
0x1425   :  { %v2664_v53 = vadd.f32 %v2663_v4, %v2662_v57 }
0x1426   :  { %v2670_v63 = vrot.slane %v2669_v0, 2 }
0x1428   :  { %v2671_v13 = vadd.f32 %v2670_v63, %v2669_v0 }
0x142a   :  { %v2672_v25 = vrot.slane %v2671_v13, 1 }
0x142c   :  { %v2673_v47 = vadd.f32 %v2672_v25, %v2671_v13 }
0x142e   :  { %v2674_v3 = vsel %vm2539_vm4, %v2664_v53, %v2673_v47 }
0x142f   :  { %3407 = vmatmul.mubr.msk.f32.vlgmr.msra.gmra.mrb[30].mxu1 %vm610_vm2, %v2674_v3 }
0x146f   :  { %v3382_v33 = vpop.f32.mrb[26].mxu0 }
0x1470   :  { %v2434_v1 = vpop.f32.mrb[27].mxu0 }
0x1471   :  { %3392 = vmatprep.mubr.msk.f32.mxu0 %vm2526_vm5, %v2434_v1  ;;  %v2861_v1 = vcvt.s32.f32 %v2860_v56 }
0x1472   :  { %3393 = vmatmul.mubr.msk.f32.vlgmr.msra.gmra.mrb[30].mxu0 %vm2526_vm5, %v3382_v33 }
0x1473   :  { %3524 = vmatpush3.bf16.msra.mxu0 %v3523_v50 }
0x1474   :  { %3525 = vmatprep.subr.bf16.mxu0 %v3957_v30 }
0x1476   :  { %v3389_v60 = vpop.f32.mrb[28].mxu0 }
0x1477   :  { %v2509_v21 = vpop.f32.mrb[29].mxu0  ;;  %3527 = vmatpush3.bf16.msra.mxu0 %v3526_v34 }
0x1478   :  { %3395 = vmatprep.mubr.msk.f32.mxu0 %vm2526_vm5, %v2509_v21 }
0x1479   :  { %3396 = vmatmul.mubr.msk.f32.gmra.mrb[32].mxu0 %vm2526_vm5, %v3389_v60 }
0x147a   :  { %3417 = vmatprep.mubr.msk.f32.mxu0 %vm3958_vm3, %v3953_v18 }
0x1502   :  { %v2755_v7 = vpop.f32.mrb[30].mxu1 }
0x1503   :  { %v2756_v32 = vadd.f32 %v3136_v35, %v2755_v7  ;;  %v3408_v23 = vpop.f32.mrb[31].mxu1 }
0x1505   :  { %v2759_v9 = vmax.f32 %v2756_v32, 0.0 }
0x1507   :  { %3418 = vmatmul.mubr.msk.f32.vlgmr.msra.gmra.mrb[34].mxu0 %vm610_vm2, %v2759_v9 }
0x1545   :  { %v3394_v49 = vpop.f32.mrb[30].mxu0 }
0x1546   :  { %v2609_v41 = vpop.f32.mrb[31].mxu0  ;;  %v2615_v59 = vadd.f32 %v3394_v49, %v3130_v58 }
0x1547   :  { %v2610_v40 = vadd.f32 %v3130_v58, %v2609_v41 }
0x1548   :  { %v2629_v11 = vmax.f32 %v2615_v59, 0.0 }
0x1549   :  { %v2628_v20 = vmax.f32 %v2610_v40, 0.0 }
0x154a   :  { %v2885_v55 = vsub.f32 %v4200_v44, %v2629_v11  ;;  %v2053_v44 = vadd.f32 0.91629076, %v4633_v31 }
0x154b   :  { %v2884_v22 = vsub.f32 %v4202_v45, %v2628_v20 }
0x154c   :  { %v3397_v6 = vpop.f32.mrb[32].mxu0  ;;  %v2889_v48 = vmul.f32 %v2885_v55, %v2885_v55 }
0x154d   :  { %v2625_v14 = vadd.f32 %v3397_v6, %v3130_v58  ;;  %v2619_v61 = vpop.f32.mrb[33].mxu0  ;;  %v2888_v46 = vmul.f32 %v2884_v22, %v2884_v22 }
0x154e   :  { %v2620_v30 = vadd.f32 %v3130_v58, %v2619_v61  ;;  %v2895_v12 = vsel %vm610_vm2, %v2889_v48, 0.0 }
0x154f   :  { %v2892_v5 = vsel %vm610_vm2, %v2888_v46, 0.0  ;;  %v2631_v63 = vmax.f32 %v2625_v14, 0.0 }
0x1550   :  { %v2630_v2 = vmax.f32 %v2620_v30, 0.0 }
0x1551   :  { %v2887_v31 = vsub.f32 %v4206_v51, %v2631_v63 }
0x1552   :  { %v2886_v28 = vsub.f32 %v4208_v52, %v2630_v2 }
0x1553   :  { %v2891_v53 = vmul.f32 %v2887_v31, %v2887_v31 }
0x1554   :  { %v2890_v57 = vmul.f32 %v2886_v28, %v2886_v28 }
0x1555   :  { %v2901_v52 = vsel %vm610_vm2, %v2891_v53, 0.0 }
0x1556   :  { %v2898_v4 = vsel %vm610_vm2, %v2890_v57, 0.0 }
0x15da   :  { %v2840_v26 = vpop.f32.mrb[34].mxu0 }
0x15db   :  { %v4698_v54 = vadd.f32 %v3138_v38, %v2840_v26  ;;  %v3419_v24 = vpop.f32.mrb[35].mxu0 }
0x15dd   :  { %v2845_v27 = vsel %vm2844_vm6, %v4698_v54, -inf }
0x15de   :  { %2846 = vmax.xlane.f32.xlu1 %v2845_v27 }
0x15ef   :  { %2918 = vrot.lane.b32.xlu1 %v2051_v10, %s3955_s29 }
0x15f3   :  { %2920 = vrot.lane.b32.xlu1 %v2052_v8, %s3955_s29 }
0x15f7   :  { %2924 = vrot.lane.b32.xlu1 %v2054_v39, %s3955_s29 }
0x161b   :  { %2896 = vadd.xlane.f32.xlu1 %v2895_v12 }
0x166b   :  { %v2847_v15 = vpop.xlane.xlu1 %2846 }
0x166c   :  { %v2848_v62 = vsub.f32 %v4698_v54, %v2847_v15  ;;  %vm2952_vm8 = vcmp.ge.f32.partialorder %v4698_v54, %v2847_v15 }
0x166d   :  { %v2953_v42 = vsel %vm2952_vm8, %v2861_v1, 4.0 }
0x166e   :  { %v2849_v16 = vmul.f32 1.442695, %v2848_v62  ;;  %v2954_v32 = vsel %vm2844_vm6, %v2953_v42, inf }
0x166f   :  { %v2919_v0 = vpop.permute.xlu1 %2918 }
0x1670   :  { %3750 = vpow2.f32 %v2849_v16  ;;  %v2930_v13 = vsel %vm610_vm2, %v2919_v0, 0.0 }
0x1673   :  { %v2921_v25 = vpop.permute.xlu1 %2920 }
0x1674   :  { %v2933_v45 = vsel %vm610_vm2, %v2921_v25, 0.0 }
0x1677   :  { %v2925_v47 = vpop.permute.xlu1 %2924 }
0x1678   :  { %v2939_v3 = vsel %vm610_vm2, %v2925_v47, 0.0 }
0x167a   :  { %v3751_v36 = vpop.eup %3750 }
0x167b   :  { %v2851_v17 = vsel %vm2844_vm6, %v3751_v36, 0.0 }
0x167c   :  { %2852 = vadd.xlane.f32.xlu0 %v2851_v17 }
0x1692   :  { %2864 = vperm.xlu0 %3557, %v4715_v29  }
0x1696   :  { %2922 = vrot.lane.b32.xlu0 %v2053_v44, %s3955_s29  ;;  %s3959_s29 = smov [#allocation15]  }
0x1697   :  { %s2980_s14 = sshll.u32 %s3959_s29, 4  ;;  %s2981_s14 = int_to_ptr.vmem [resolvable:$true] %s2980_s14 }
0x1698   :  { %s3887_s11 = scalar_lea.vmem %s2981_s14, 16  ;;  %s3891_s4 = scalar_lea.vmem %s2981_s14, 32 }
0x1699   :  { %p3888_p6 = scmp.ne.s32.totalorder %s2981_s14, %s3887_s11  ;;  %p3892_p7 = scmp.lt.s32.totalorder %s2981_s14, %s2981_s14 }
0x169a   :  { %p3893_p8 = scmp.lt.s32.totalorder %s3891_s4, %s3887_s11 }
0x169c   :  { %p3894_p9 = por %p3893_p8, %p3892_p7 }
0x169e   :  { %p3895_p10 = pnand %p3894_p9, %p3888_p6 }
0x16a8   :  { %v2897_v41 = vpop.xlane.xlu1 %2896 }
0x16b5   :  { %2893 = vadd.xlane.f32.xlu0 %v2892_v5 }
0x16b9   :  { %2899 = vadd.xlane.f32.xlu0 %v2898_v4 }
0x16bd   :  { %2931 = vadd.xlane.f32.xlu0 %v2930_v13 }
0x16c1   :  { %2934 = vadd.xlane.f32.xlu0 %v2933_v45 }
0x16c5   :  { %2902 = vadd.xlane.f32.xlu0 %v2901_v52 }
0x16c9   :  { %2940 = vadd.xlane.f32.xlu0 %v2939_v3 }
0x1709   :  { %v2853_v37 = vpop.xlane.xlu0 %2852 }
0x170a   :  { %3752 = vlog2.f32 %v2853_v37 }
0x1711   :  { %v2865_v51 = vpop.permute.xlu0 %2864 }
0x1712   :  { %vm2867_vm7 = vcmp.eq.f32.partialorder %v2861_v1, %v2865_v51 }
0x1713   :  { %v3140_v34 = vsel %vm2867_vm7, 1.0, %v3953_v18 }
0x1714   :  { %v3753_v33 = vpop.eup %3752 }
0x1715   :  { %v2855_v50 = vmul.f32 0.6931472, %v3753_v33  ;;  %v2923_v60 = vpop.permute.xlu0 %2922 }
0x1716   :  { %v2936_v21 = vsel %vm610_vm2, %v2923_v60, 0.0 }
0x1717   :  { %v2856_v19 = vadd.f32 %v2855_v50, %v2847_v15  ;;  %2937 = vadd.xlane.f32.xlu1 %v2936_v21 }
0x1719   :  { %v2857_v43 = vsub.f32 %v4698_v54, %v2856_v19 }
0x171b   :  { %v2870_v35 = vmul.f32 %v3140_v34, %v2857_v43 }
0x171d   :  { %v2871_v7 = vsel %vm2844_vm6, %v2870_v35, 0.0 }
0x171e   :  { %2872 = vadd.xlane.f32.xlu1 %v2871_v7 }
0x1722   :  { %2955 = vmin.xlane.f32.xlu1 %v2954_v32 }
0x1742   :  { %v2894_v23 = vpop.xlane.xlu0 %2893 }
0x1743   :  { %v2904_v40 = vadd.f32 %v2897_v41, %v2894_v23 }
0x1746   :  { %v2900_v9 = vpop.xlane.xlu0 %2899 }
0x1747   :  { %v2905_v14 = vadd.f32 %v2904_v40, %v2900_v9 }
0x174a   :  { %v2932_v58 = vpop.xlane.xlu0 %2931 }
0x174e   :  { %v2935_v49 = vpop.xlane.xlu0 %2934 }
0x174f   :  { %v2942_v30 = vadd.f32 %v2935_v49, %v2932_v58 }
0x1752   :  { %v2903_v6 = vpop.xlane.xlu0 %2902 }
0x1753   :  { %v2906_v61 = vadd.f32 %v2905_v14, %v2903_v6 }
0x1755   :  { %v2907_v38 = vrot.slane %v2906_v61, 4 }
0x1756   :  { %v2941_v24 = vpop.xlane.xlu0 %2940 }
0x1757   :  { %v2908_v27 = vadd.f32 %v2907_v38, %v2906_v61 }
0x1759   :  { %v2909_v39 = vrot.slane %v2908_v27, 2 }
0x175b   :  { %v2910_v15 = vadd.f32 %v2909_v39, %v2908_v27 }
0x175d   :  { %v2911_v2 = vrot.slane %v2910_v15, 1 }
0x175f   :  { %v2912_v0 = vadd.f32 %v2911_v2, %v2910_v15 }
0x1761   :  { %v2913_v53 = vmul.f32 0.0009765625, %v2912_v0 }
0x17a4   :  { %v2938_v26 = vpop.xlane.xlu1 %2937 }
0x17a5   :  { %v2943_v54 = vadd.f32 %v2942_v30, %v2938_v26 }
0x17a7   :  { %v2944_v10 = vadd.f32 %v2943_v54, %v2941_v24 }
0x17a9   :  { %v2945_v8 = vrot.slane %v2944_v10, 4 }
0x17ab   :  { %v2946_v59 = vadd.f32 %v2945_v8, %v2944_v10  ;;  %v2873_v11 = vpop.xlane.xlu1 %2872 }
0x17ac   :  { %v2875_v55 = vsel %vm2874_vm9, %v2873_v11, 0.0 }
0x17ad   :  { %v2947_v48 = vrot.slane %v2946_v59, 2  ;;  %v2876_v12 = vrot.slane %v2875_v55, 4 }
0x17af   :  { %v2877_v62 = vadd.f32 %v2876_v12, %v2875_v55  ;;  %v2956_v16 = vpop.xlane.xlu1 %2955  ;;  %v2948_v36 = vadd.f32 %v2947_v48, %v2946_v59 }
0x17b0   :  { %vm2957_vm11 = vcmp.eq.f32.partialorder %v2956_v16, %v4715_v29 }
0x17b1   :  { %v2878_v17 = vrot.slane %v2877_v62, 2  ;;  %v3141_v44 = vsel %vm2957_vm11, 1.0, %v3953_v18  ;;  %v2949_v28 = vrot.slane %v2948_v36, 1 }
0x17b2   :  { %v2965_v20 = vsel %vm2964_vm10, %v3141_v44, 0.0 }
0x17b3   :  { %v2879_v22 = vadd.f32 %v2878_v17, %v2877_v62  ;;  %v2966_v46 = vrot.slane %v2965_v20, 4  ;;  %v2950_v31 = vadd.f32 %v2949_v28, %v2948_v36 }
0x17b5   :  { %v2880_v5 = vrot.slane %v2879_v22, 1  ;;  %v2967_v57 = vadd.f32 %v2966_v46, %v2965_v20  ;;  %v2951_v52 = vmul.f32 0.0009765625, %v2950_v31 }
0x17b7   :  { %v2881_v63 = vadd.f32 %v2880_v5, %v2879_v22  ;;  %v2968_v4 = vrot.slane %v2967_v57, 2 }
0x17b9   :  { %v2882_v13 = vsub.f32 0.0, %v2881_v63  ;;  %v2969_v25 = vadd.f32 %v2968_v4, %v2967_v57 }
0x17bb   :  { %v2883_v45 = vmul.f32 0.5, %v2882_v13  ;;  %v2970_v29 = vrot.slane %v2969_v25, 1 }
0x17bd   :  { %v2960_v18 = vadd.f32 %v2913_v53, %v2883_v45  ;;  %v2971_v47 = vadd.f32 %v2970_v29, %v2969_v25 }
0x17bf   :  { %v2961_v3 = vadd.f32 %v2960_v18, %v2951_v52  ;;  %v2972_v37 = vmul.f32 0.5, %v2971_v47 }
0x17c1   :  { %2963 = vst.msk [vmem:[#allocation15] sm:$0x1] %vm2962_vm12, %v2961_v3  ;;  %2973 = vst.msk [vmem:[#allocation16] sm:$0x1] %vm2962_vm12, %v2972_v37 }
0x17c2   :  { %3898 = shalt.err (!%p3895_p10)
}
0x17c3   :  { %s3899_s24 = scalar_lea.hbm %s4788_s19, 16 }
0x17c4   :  { %p3900_p11 = scmp.ne.s32.totalorder %s4788_s19, %s3899_s24  ;;  %p3903_p12 = scmp.lt.u32.totalorder %s3899_s24, %s4788_s19 }
0x17c6   :  { %p3905_p13 = pnand %p3903_p12, %p3900_p11 }
0x17c8   :  { %3908 = shalt.err (!%p3905_p13)
}
0x17c9   :  { %2983 = dma.vmem_to_hbm [thread:$0]  %s2981_s14, 16, %s4788_s19, [#allocation6]  }
0x17ca   :  { %s3909_s3 = scalar_lea.vmem %s4738_s23, 16  ;;  %s3913_s9 = scalar_lea.vmem %s4738_s23, 32 }
0x17cb   :  { %p3910_p0 = scmp.ne.s32.totalorder %s4738_s23, %s3909_s3  ;;  %p3914_p1 = scmp.lt.s32.totalorder %s4738_s23, %s4738_s23 }
0x17cc   :  { %p3915_p2 = scmp.lt.s32.totalorder %s3913_s9, %s3909_s3 }
0x17ce   :  { %p3916_p3 = por %p3915_p2, %p3914_p1 }
0x17d0   :  { %p3917_p4 = pnand %p3916_p3, %p3910_p0 }
0x17d2   :  { %3920 = shalt.err (!%p3917_p4)
}
0x17d3   :  { %s3921_s8 = scalar_lea.hbm %s4789_s20, 16 }
0x17d4   :  { %p3922_p5 = scmp.ne.s32.totalorder %s4789_s20, %s3921_s8  ;;  %p3925_p6 = scmp.lt.u32.totalorder %s3921_s8, %s4789_s20 }
0x17d6   :  { %p3927_p7 = pnand %p3925_p6, %p3922_p5 }
0x17d8   :  { %3930 = shalt.err (!%p3927_p7)
}
0x17d9   :  { %2993 = dma.vmem_to_hbm [thread:$0]  %s4738_s23, 16, %s4789_s20, [#allocation17]  }
0x17da   :  { %3939 = dma.done.wait [#allocation6], 16  }
0x17db   :  { %3940 = vsyncadd [#allocation6], 4294967280 }
0x17dc   :  { %3941 = dma.done.wait [#allocation17], 16  }
0x17dd   :  { %3942 = vsyncadd [#allocation17], 4294967280 }
0x17de   :  { %3000 = vsyncpa [#allocation5], 1 }
0x17df   :  { %3001 = vsyncpa [#allocation8], 1 }
0x17e0   :  { %3002 = vsyncpa [#allocation11], 1 }
0x17e1   :  { %3003 = vsyncpa [#allocation14], 1 }
0x17e2   :  { %3004 = vsyncpa [#allocation6], 1 }
0x17e3   :  { %3005 = vsyncpa [#allocation17], 1 }

</bundles_post_ra>
